<compile_context>
chip_gen: v7x
topology: tpu7x:2x2x1
jax: 0.10.0
libtpu: 0.0.40
codegen_flags: <defaults>
</compile_context>

<pallas_src>
import functools

import jax
import jax.numpy as jnp
from jax.experimental import pallas as pl
from jax.experimental.pallas import tpu as pltpu


def _edge_loss_kernel(pred_ref, edge_ref, out_ref,
                      seg_sum_sc, cnt_sc, mu_sc, num_sc, den_sc,
                      *, delta, num_labels, n_buckets):
    """Grid = (batch, phase, q_tile). Phase 0: bucket sums; phase 1: distances."""
    ph = pl.program_id(1)
    t = pl.program_id(2)
    nt = pl.num_programs(2)
    C, tq = pred_ref.shape[1], pred_ref.shape[2]

    # ---- shared per-tile compute (needed by both phases) -------------------
    logits = pred_ref[0].astype(jnp.float32)                      # (C, TQ)
    m = jnp.max(logits, axis=0, keepdims=True)
    ex = jnp.exp(logits - m)
    seg = ex / jnp.sum(ex, axis=0, keepdims=True)                 # (C, TQ) f32

    e = edge_ref[0]                                               # (1, TQ) int32
    # Map the ignore label 255 into its own bucket; all other labels are
    # assumed to lie in [0, num_labels - 1].
    bucket = jnp.where(e == 255, num_labels, e)                   # (1, TQ)
    lbl = jax.lax.broadcasted_iota(jnp.int32, (n_buckets, tq), 0)
    onehot = (lbl == bucket).astype(jnp.bfloat16)                 # (L, TQ), exact in bf16

    dn_t = (((1,), (1,)), ((), ()))     # contract the pixel (lane) axis of both
    dn_n = (((1,), (0,)), ((), ()))     # ordinary matmul

    # ---- phase 0: per-bucket softmax sums + per-bucket pixel counts (MXU) --
    @pl.when(ph == 0)
    def _():
        @pl.when(t == 0)
        def _():
            seg_sum_sc[...] = jnp.zeros_like(seg_sum_sc)
            cnt_sc[...] = jnp.zeros_like(cnt_sc)

        seg_sum_sc[...] += jax.lax.dot_general(
            seg.astype(jnp.bfloat16), onehot, dn_t,
            preferred_element_type=jnp.float32)                   # (C, L)
        # counts via an MXU ones-row matmul instead of a cross-lane reduce
        cnt_sc[...] += jax.lax.dot_general(
            jnp.ones((1, tq), jnp.bfloat16), onehot, dn_t,
            preferred_element_type=jnp.float32)                   # (1, L)

    # ---- phase 1: |seg - mu_expand|, clamp at delta, masked mean -----------
    @pl.when(ph == 1)
    def _():
        @pl.when(t == 0)
        def _():
            # empty buckets: count clamped to 1, mu row = 0, never gathered
            inv_cnt = pl.reciprocal(jnp.maximum(cnt_sc[...], 1.0), approx=True)
            mu_sc[...] = (seg_sum_sc[...] * inv_cnt).astype(jnp.bfloat16)
            num_sc[...] = jnp.zeros_like(num_sc)
            den_sc[...] = jnp.zeros_like(den_sc)

        mu_expand = jax.lax.dot_general(
            mu_sc[...], onehot, dn_n,
            preferred_element_type=jnp.float32)                   # (C, TQ)
        dist = jnp.sum(jnp.abs(seg - mu_expand), axis=0, keepdims=True)  # (1, TQ)
        dist = jnp.maximum(dist - delta, 0.0)
        mask = jnp.logical_and(e != 0, e != 255).astype(jnp.float32)     # (1, TQ)
        # (1,1) partial sums broadcast into the lane-dense (1,128) accumulators
        num_sc[...] += jnp.sum(dist * mask, keepdims=True)
        den_sc[...] += jnp.sum(mask, keepdims=True)

        @pl.when(t == nt - 1)
        def _():
            l_var = num_sc[...] * pl.reciprocal(den_sc[...] + 1e-5, approx=True)
            out_ref[...] = l_var.reshape(1, 1, 128)

    # TODO(synk): edge_balance=True path (per-unique-label balanced mean of
    # distances) is not lowered; only the module's default (False) branch is.


def _pick_q_tile(n, n_buckets):
    """Largest q-tile dividing N; cap it so the (L, TQ) one-hot stays small."""
    cap = 512 if n_buckets <= 128 else 256
    if n <= cap:
        return n
    for t in (512, 256, 128):
        if t <= cap and n % t == 0:
            return t
    # TODO(synk): pad N to a multiple of 128 for awkward spatial sizes; for
    # now fall back to a single full-width tile.
    return n


def edge_loss_pallas(pred_sg_up, edge_v, *, delta=0.1, num_labels=256):
    """EdgeLoss forward (edge_balance=False).

    Labels in `edge_v` must be integer-valued, in [0, num_labels - 1] or 255.
    """
    B, C, H, W = pred_sg_up.shape
    N = H * W
    pred_f = pred_sg_up.reshape(B, C, N)                 # native dtype through DMA
    edge_i = edge_v.reshape(B, 1, N).astype(jnp.int32)   # exact integer compares

    n_buckets = (num_labels + 1 + 7) // 8 * 8            # +1 bucket for label 255
    tq = _pick_q_tile(N, n_buckets)
    n_tiles = N // tq

    kernel = functools.partial(
        _edge_loss_kernel, delta=float(delta), num_labels=int(num_labels),
        n_buckets=n_buckets)

    out = pl.pallas_call(
        kernel,
        out_shape=jax.ShapeDtypeStruct((B, 1, 128), jnp.float32),
        grid_spec=pltpu.PrefetchScalarGridSpec(
            num_scalar_prefetch=0,
            grid=(B, 2, n_tiles),
            in_specs=[
                pl.BlockSpec((1, C, tq), lambda b, ph, t: (b, 0, t)),
                pl.BlockSpec((1, 1, tq), lambda b, ph, t: (b, 0, t)),
            ],
            out_specs=pl.BlockSpec((1, 1, 128), lambda b, ph, t: (b, 0, 0)),
            scratch_shapes=[
                pltpu.VMEM((C, n_buckets), jnp.float32),   # segmented softmax sums
                pltpu.VMEM((1, n_buckets), jnp.float32),   # per-bucket counts
                pltpu.VMEM((C, n_buckets), jnp.bfloat16),  # mu
                pltpu.VMEM((1, 128), jnp.float32),         # numerator
                pltpu.VMEM((1, 128), jnp.float32),         # denominator
            ]),
        compiler_params=pltpu.CompilerParams(
            dimension_semantics=("parallel", "arbitrary", "arbitrary"),
            vmem_limit_bytes=48 * 1024 * 1024),
    )(pred_f, edge_i)

    # per-batch partial losses (lane 0 of each row); mean in JAX
    return jnp.mean(out[:, 0, 0])


def edge_loss_ref(pred_sg_up, edge_v, *, delta=0.1):
    """Pure-JAX f32 reference with the torch semantics (edge_balance=False)."""
    B, C, H, W = pred_sg_up.shape
    N = H * W
    seg = jax.nn.softmax(pred_sg_up.astype(jnp.float32), axis=1).reshape(B, C, N)
    e = edge_v.reshape(B, N).astype(jnp.float32)
    total = jnp.float32(0.0)
    for i in range(B):
        eq = (e[i][:, None] == e[i][None, :]).astype(jnp.float32)
        counts = eq.sum(axis=0)
        mu_expand = (seg[i] @ eq) / counts
        dist = jnp.abs(seg[i] - mu_expand).sum(axis=0)
        dist = jnp.maximum(dist - delta, 0.0)
        mask = ((e[i] != 0.0) & (e[i] != 255.0)).astype(jnp.float32)
        total = total + (dist * mask).sum() / (mask.sum() + 1e-5)
    return total / B


if __name__ == "__main__":
    key = jax.random.PRNGKey(0)
    k1, k2, k3, k4 = jax.random.split(key, 4)

    # ---- case 1: single q-tile path (N = 256), default label alphabet ------
    B, C, H, W = 2, 4, 16, 16
    pred = jax.random.normal(k1, (B, C, H, W), dtype=jnp.float32)
    labels = jax.random.randint(k2, (B, H, W), 0, 6)
    edge = jnp.where(labels == 5, 255, labels).astype(jnp.float32)

    loss = edge_loss_pallas(pred, edge, delta=0.1)
    jax.block_until_ready(loss)
    ref = edge_loss_ref(pred, edge, delta=0.1)
    # bf16 matmul operands + approx reciprocals -> loosened tolerance
    assert jnp.allclose(loss, ref, rtol=5e-2, atol=5e-3), (loss, ref)

    # ---- case 2: multi q-tile path (N = 1024 -> 2 tiles of 512), small L ---
    B2, C2, H2, W2 = 2, 4, 32, 32
    pred2 = jax.random.normal(k3, (B2, C2, H2, W2), dtype=jnp.float32)
    labels2 = jax.random.randint(k4, (B2, H2, W2), 0, 6)
    edge2 = jnp.where(labels2 == 5, 255, labels2).astype(jnp.float32)

    loss2 = edge_loss_pallas(pred2, edge2, delta=0.1, num_labels=8)
    jax.block_until_ready(loss2)
    ref2 = edge_loss_ref(pred2, edge2, delta=0.1)
    assert jnp.allclose(loss2, ref2, rtol=5e-2, atol=5e-3), (loss2, ref2)

    print("KERNEL_OK")
</pallas_src>

<mosaic_0001>
module attributes {stable_mosaic.version = 11 : i64} {
  func.func @_edge_loss_kernel(%arg0: i32, %arg1: i32, %arg2: i32, %arg3: memref<1x4x256xf32, #tpu.memory_space<vmem>>, %arg4: memref<1x1x256xi32, #tpu.memory_space<vmem>>, %arg5: memref<1x1x128xf32, #tpu.memory_space<vmem>>, %arg6: memref<4x264xf32, #tpu.memory_space<vmem>>, %arg7: memref<1x264xf32, #tpu.memory_space<vmem>>, %arg8: memref<4x264xbf16, #tpu.memory_space<vmem>>, %arg9: memref<1x128xf32, #tpu.memory_space<vmem>>, %arg10: memref<1x128xf32, #tpu.memory_space<vmem>>) attributes {dimension_semantics = [#tpu.dimension_semantics<parallel>, #tpu.dimension_semantics<arbitrary>, #tpu.dimension_semantics<arbitrary>], iteration_bounds = array<i64: 2, 2, 1>, scalar_prefetch = 0 : i64, scratch_operands = 5 : i64, tpu.core_type = #tpu.core_type<tc>, window_params = [{transform_indices = @transform_0, window_bounds = array<i64: 1, 4, 256>}, {transform_indices = @transform_1, window_bounds = array<i64: 1, 1, 256>}, {transform_indices = @transform_2, window_bounds = array<i64: 1, 1, 128>}]} {
    %c0 = arith.constant 0 : index
    %c0_0 = arith.constant 0 : index
    %c0_1 = arith.constant 0 : index
    %0 = vector.load %arg3[%c0, %c0_0, %c0_1] : memref<1x4x256xf32, #tpu.memory_space<vmem>>, vector<1x4x256xf32>
    %1 = vector.shape_cast %0 : vector<1x4x256xf32> to vector<4x256xf32>
    %cst = arith.constant dense<0xFF800000> : vector<256xf32>
    %2 = vector.multi_reduction <maximumf>, %1, %cst [0] : vector<4x256xf32> to vector<256xf32>
    %3 = vector.shape_cast %2 : vector<256xf32> to vector<1x256xf32>
    %4 = vector.broadcast %3 : vector<1x256xf32> to vector<4x256xf32>
    %5 = arith.subf %1, %4 : vector<4x256xf32>
    %6 = math.exp %5 : vector<4x256xf32>
    %cst_2 = arith.constant dense<0.000000e+00> : vector<256xf32>
    %7 = vector.multi_reduction <add>, %6, %cst_2 [0] : vector<4x256xf32> to vector<256xf32>
    %8 = vector.shape_cast %7 : vector<256xf32> to vector<1x256xf32>
    %9 = vector.broadcast %8 : vector<1x256xf32> to vector<4x256xf32>
    %10 = arith.divf %6, %9 : vector<4x256xf32>
    %c0_3 = arith.constant 0 : index
    %c0_4 = arith.constant 0 : index
    %c0_5 = arith.constant 0 : index
    %11 = vector.load %arg4[%c0_3, %c0_4, %c0_5] : memref<1x1x256xi32, #tpu.memory_space<vmem>>, vector<1x1x256xi32>
    %12 = vector.shape_cast %11 : vector<1x1x256xi32> to vector<1x256xi32>
    %c255_i32 = arith.constant 255 : i32
    %13 = vector.broadcast %c255_i32 : i32 to vector<1x256xi32>
    %14 = arith.cmpi eq, %12, %13 : vector<1x256xi32>
    %c256_i32 = arith.constant 256 : i32
    %15 = vector.broadcast %c256_i32 : i32 to vector<1x256xi32>
    %16 = arith.select %14, %15, %12 : vector<1x256xi1>, vector<1x256xi32>
    %17 = tpu.iota {dimensions = array<i32: 0>} : vector<264x256xi32>
    %18 = vector.broadcast %16 : vector<1x256xi32> to vector<264x256xi32>
    %19 = arith.cmpi eq, %17, %18 : vector<264x256xi32>
    %20 = arith.extui %19 : vector<264x256xi1> to vector<264x256xi32>
    %21 = arith.sitofp %20 : vector<264x256xi32> to vector<264x256xf32>
    %22 = arith.truncf %21 : vector<264x256xf32> to vector<264x256xbf16>
    %c0_i32 = arith.constant 0 : i32
    %23 = arith.cmpi eq, %arg1, %c0_i32 : i32
    %24 = arith.extui %23 : i1 to i32
    %c0_i32_6 = arith.constant 0 : i32
    %25 = arith.cmpi ne, %24, %c0_i32_6 : i32
    scf.if %25 {
      %c0_i32_8 = arith.constant 0 : i32
      %29 = arith.cmpi eq, %arg2, %c0_i32_8 : i32
      %30 = arith.extui %29 : i1 to i32
      %c0_i32_9 = arith.constant 0 : i32
      %31 = arith.cmpi ne, %30, %c0_i32_9 : i32
      scf.if %31 {
        %cst_21 = arith.constant 0.000000e+00 : f32
        %42 = vector.broadcast %cst_21 : f32 to vector<4x264xf32>
        %c0_22 = arith.constant 0 : index
        %c0_23 = arith.constant 0 : index
        %43 = vector.load %arg6[%c0_22, %c0_23] : memref<4x264xf32, #tpu.memory_space<vmem>>, vector<4x264xf32>
        tpu.vector_store %arg6[%c0_22, %c0_23], %42 {strides = array<i32>} : memref<4x264xf32, #tpu.memory_space<vmem>>, vector<4x264xf32>,
        %cst_24 = arith.constant 0.000000e+00 : f32
        %44 = vector.broadcast %cst_24 : f32 to vector<1x264xf32>
        %c0_25 = arith.constant 0 : index
        %c0_26 = arith.constant 0 : index
        %45 = vector.load %arg7[%c0_25, %c0_26] : memref<1x264xf32, #tpu.memory_space<vmem>>, vector<1x264xf32>
        tpu.vector_store %arg7[%c0_25, %c0_26], %44 {strides = array<i32>} : memref<1x264xf32, #tpu.memory_space<vmem>>, vector<1x264xf32>,
      } else {
      }
      %c0_10 = arith.constant 0 : index
      %c0_11 = arith.constant 0 : index
      %32 = vector.load %arg6[%c0_10, %c0_11] : memref<4x264xf32, #tpu.memory_space<vmem>>, vector<4x264xf32>
      %33 = arith.truncf %10 : vector<4x256xf32> to vector<4x256xbf16>
      %cst_12 = arith.constant dense<0.000000e+00> : vector<4x264xf32>
      %34 = tpu.matmul %33, %22, %cst_12 {dimension_numbers = #tpu.dot_dimension_numbers<[1], [1], [0], [0], [0, 0, 1, 0], [], []>} : vector<4x256xbf16>, vector<264x256xbf16>, vector<4x264xf32> -> vector<4x264xf32>
      %35 = arith.addf %32, %34 : vector<4x264xf32>
      %c0_13 = arith.constant 0 : index
      %c0_14 = arith.constant 0 : index
      %36 = vector.load %arg6[%c0_13, %c0_14] : memref<4x264xf32, #tpu.memory_space<vmem>>, vector<4x264xf32>
      tpu.vector_store %arg6[%c0_13, %c0_14], %35 {strides = array<i32>} : memref<4x264xf32, #tpu.memory_space<vmem>>, vector<4x264xf32>,
      %c0_15 = arith.constant 0 : index
      %c0_16 = arith.constant 0 : index
      %37 = vector.load %arg7[%c0_15, %c0_16] : memref<1x264xf32, #tpu.memory_space<vmem>>, vector<1x264xf32>
      %cst_17 = arith.constant 1.000000e+00 : bf16
      %38 = vector.broadcast %cst_17 : bf16 to vector<1x256xbf16>
      %cst_18 = arith.constant dense<0.000000e+00> : vector<1x264xf32>
      %39 = tpu.matmul %38, %22, %cst_18 {dimension_numbers = #tpu.dot_dimension_numbers<[1], [1], [0], [0], [0, 0, 1, 0], [], []>} : vector<1x256xbf16>, vector<264x256xbf16>, vector<1x264xf32> -> vector<1x264xf32>
      %40 = arith.addf %37, %39 : vector<1x264xf32>
      %c0_19 = arith.constant 0 : index
      %c0_20 = arith.constant 0 : index
      %41 = vector.load %arg7[%c0_19, %c0_20] : memref<1x264xf32, #tpu.memory_space<vmem>>, vector<1x264xf32>
      tpu.vector_store %arg7[%c0_19, %c0_20], %40 {strides = array<i32>} : memref<1x264xf32, #tpu.memory_space<vmem>>, vector<1x264xf32>,
    } else {
    }
    %c1_i32 = arith.constant 1 : i32
    %26 = arith.cmpi eq, %arg1, %c1_i32 : i32
    %27 = arith.extui %26 : i1 to i32
    %c0_i32_7 = arith.constant 0 : i32
    %28 = arith.cmpi ne, %27, %c0_i32_7 : i32
    scf.if %28 {
      %c0_i32_8 = arith.constant 0 : i32
      %29 = arith.cmpi eq, %arg2, %c0_i32_8 : i32
      %30 = arith.extui %29 : i1 to i32
      %c0_i32_9 = arith.constant 0 : i32
      %31 = arith.cmpi ne, %30, %c0_i32_9 : i32
      scf.if %31 {
        %c0_30 = arith.constant 0 : index
        %c0_31 = arith.constant 0 : index
        %71 = vector.load %arg7[%c0_30, %c0_31] : memref<1x264xf32, #tpu.memory_space<vmem>>, vector<1x264xf32>
        %cst_32 = arith.constant 1.000000e+00 : f32
        %72 = vector.broadcast %cst_32 : f32 to vector<1x264xf32>
        %73 = arith.maximumf %71, %72 : vector<1x264xf32>
        %74 = tpu.reciprocal %73 {approx = true} : vector<1x264xf32> -> vector<1x264xf32>
        %c0_33 = arith.constant 0 : index
        %c0_34 = arith.constant 0 : index
        %75 = vector.load %arg6[%c0_33, %c0_34] : memref<4x264xf32, #tpu.memory_space<vmem>>, vector<4x264xf32>
        %76 = vector.broadcast %74 : vector<1x264xf32> to vector<4x264xf32>
        %77 = arith.mulf %75, %76 : vector<4x264xf32>
        %78 = arith.truncf %77 : vector<4x264xf32> to vector<4x264xbf16>
        %c0_35 = arith.constant 0 : index
        %c0_36 = arith.constant 0 : index
        %79 = vector.load %arg8[%c0_35, %c0_36] : memref<4x264xbf16, #tpu.memory_space<vmem>>, vector<4x264xbf16>
        tpu.vector_store %arg8[%c0_35, %c0_36], %78 {strides = array<i32>} : memref<4x264xbf16, #tpu.memory_space<vmem>>, vector<4x264xbf16>,
        %cst_37 = arith.constant 0.000000e+00 : f32
        %80 = vector.broadcast %cst_37 : f32 to vector<1x128xf32>
        %c0_38 = arith.constant 0 : index
        %c0_39 = arith.constant 0 : index
        %81 = vector.load %arg9[%c0_38, %c0_39] : memref<1x128xf32, #tpu.memory_space<vmem>>, vector<1x128xf32>
        tpu.vector_store %arg9[%c0_38, %c0_39], %80 {strides = array<i32>} : memref<1x128xf32, #tpu.memory_space<vmem>>, vector<1x128xf32>,
        %cst_40 = arith.constant 0.000000e+00 : f32
        %82 = vector.broadcast %cst_40 : f32 to vector<1x128xf32>
        %c0_41 = arith.constant 0 : index
        %c0_42 = arith.constant 0 : index
        %83 = vector.load %arg10[%c0_41, %c0_42] : memref<1x128xf32, #tpu.memory_space<vmem>>, vector<1x128xf32>
        tpu.vector_store %arg10[%c0_41, %c0_42], %82 {strides = array<i32>} : memref<1x128xf32, #tpu.memory_space<vmem>>, vector<1x128xf32>,
      } else {
      }
      %c0_10 = arith.constant 0 : index
      %c0_11 = arith.constant 0 : index
      %32 = vector.load %arg8[%c0_10, %c0_11] : memref<4x264xbf16, #tpu.memory_space<vmem>>, vector<4x264xbf16>
      %cst_12 = arith.constant dense<0.000000e+00> : vector<4x256xf32>
      %33 = tpu.matmul %32, %22, %cst_12 {dimension_numbers = #tpu.dot_dimension_numbers<[1], [0], [0], [1], [0, 0, 1, 1], [], []>} : vector<4x264xbf16>, vector<264x256xbf16>, vector<4x256xf32> -> vector<4x256xf32>
      %34 = arith.subf %10, %33 : vector<4x256xf32>
      %35 = math.absf %34 : vector<4x256xf32>
      %cst_13 = arith.constant dense<0.000000e+00> : vector<256xf32>
      %36 = vector.multi_reduction <add>, %35, %cst_13 [0] : vector<4x256xf32> to vector<256xf32>
      %37 = vector.shape_cast %36 : vector<256xf32> to vector<1x256xf32>
      %cst_14 = arith.constant 1.000000e-01 : f32
      %38 = vector.broadcast %cst_14 : f32 to vector<1x256xf32>
      %39 = arith.subf %37, %38 : vector<1x256xf32>
      %cst_15 = arith.constant 0.000000e+00 : f32
      %40 = vector.broadcast %cst_15 : f32 to vector<1x256xf32>
      %41 = arith.maximumf %39, %40 : vector<1x256xf32>
      %c0_i32_16 = arith.constant 0 : i32
      %42 = vector.broadcast %c0_i32_16 : i32 to vector<1x256xi32>
      %43 = arith.cmpi ne, %12, %42 : vector<1x256xi32>
      %c255_i32_17 = arith.constant 255 : i32
      %44 = vector.broadcast %c255_i32_17 : i32 to vector<1x256xi32>
      %45 = arith.cmpi ne, %12, %44 : vector<1x256xi32>
      %46 = arith.andi %43, %45 : vector<1x256xi1>
      %47 = arith.extui %46 : vector<1x256xi1> to vector<1x256xi32>
      %48 = arith.sitofp %47 : vector<1x256xi32> to vector<1x256xf32>
      %c0_18 = arith.constant 0 : index
      %c0_19 = arith.constant 0 : index
      %49 = vector.load %arg9[%c0_18, %c0_19] : memref<1x128xf32, #tpu.memory_space<vmem>>, vector<1x128xf32>
      %50 = arith.mulf %41, %48 : vector<1x256xf32>
      %51 = vector.shape_cast %50 : vector<1x256xf32> to vector<1x1x256xf32>
      %cst_20 = arith.constant dense<0.000000e+00> : vector<1xf32>
      %52 = vector.multi_reduction <add>, %51, %cst_20 [1, 2] : vector<1x1x256xf32> to vector<1xf32>
      %53 = vector.shape_cast %52 : vector<1xf32> to vector<1x1x1xf32>
      %54 = vector.extract %53[0, 0, 0] : f32 from vector<1x1x1xf32>
      %55 = vector.broadcast %54 : f32 to vector<1x1xf32>
      %56 = vector.broadcast %55 : vector<1x1xf32> to vector<1x128xf32>
      %57 = arith.addf %49, %56 : vector<1x128xf32>
      %c0_21 = arith.constant 0 : index
      %c0_22 = arith.constant 0 : index
      %58 = vector.load %arg9[%c0_21, %c0_22] : memref<1x128xf32, #tpu.memory_space<vmem>>, vector<1x128xf32>
      tpu.vector_store %arg9[%c0_21, %c0_22], %57 {strides = array<i32>} : memref<1x128xf32, #tpu.memory_space<vmem>>, vector<1x128xf32>,
      %c0_23 = arith.constant 0 : index
      %c0_24 = arith.constant 0 : index
      %59 = vector.load %arg10[%c0_23, %c0_24] : memref<1x128xf32, #tpu.memory_space<vmem>>, vector<1x128xf32>
      %60 = vector.shape_cast %48 : vector<1x256xf32> to vector<1x1x256xf32>
      %cst_25 = arith.constant dense<0.000000e+00> : vector<1xf32>
      %61 = vector.multi_reduction <add>, %60, %cst_25 [1, 2] : vector<1x1x256xf32> to vector<1xf32>
      %62 = vector.shape_cast %61 : vector<1xf32> to vector<1x1x1xf32>
      %63 = vector.extract %62[0, 0, 0] : f32 from vector<1x1x1xf32>
      %64 = vector.broadcast %63 : f32 to vector<1x1xf32>
      %65 = vector.broadcast %64 : vector<1x1xf32> to vector<1x128xf32>
      %66 = arith.addf %59, %65 : vector<1x128xf32>
      %c0_26 = arith.constant 0 : index
      %c0_27 = arith.constant 0 : index
      %67 = vector.load %arg10[%c0_26, %c0_27] : memref<1x128xf32, #tpu.memory_space<vmem>>, vector<1x128xf32>
      tpu.vector_store %arg10[%c0_26, %c0_27], %66 {strides = array<i32>} : memref<1x128xf32, #tpu.memory_space<vmem>>, vector<1x128xf32>,
      %c0_i32_28 = arith.constant 0 : i32
      %68 = arith.cmpi eq, %arg2, %c0_i32_28 : i32
      %69 = arith.extui %68 : i1 to i32
      %c0_i32_29 = arith.constant 0 : i32
      %70 = arith.cmpi ne, %69, %c0_i32_29 : i32
      scf.if %70 {
        %c0_30 = arith.constant 0 : index
        %c0_31 = arith.constant 0 : index
        %71 = vector.load %arg9[%c0_30, %c0_31] : memref<1x128xf32, #tpu.memory_space<vmem>>, vector<1x128xf32>
        %c0_32 = arith.constant 0 : index
        %c0_33 = arith.constant 0 : index
        %72 = vector.load %arg10[%c0_32, %c0_33] : memref<1x128xf32, #tpu.memory_space<vmem>>, vector<1x128xf32>
        %cst_34 = arith.constant 9.99999974E-6 : f32
        %73 = vector.broadcast %cst_34 : f32 to vector<1x128xf32>
        %74 = arith.addf %72, %73 : vector<1x128xf32>
        %75 = tpu.reciprocal %74 {approx = true} : vector<1x128xf32> -> vector<1x128xf32>
        %76 = arith.mulf %71, %75 : vector<1x128xf32>
        %77 = vector.shape_cast %76 : vector<1x128xf32> to vector<1x1x128xf32>
        %c0_35 = arith.constant 0 : index
        %c0_36 = arith.constant 0 : index
        %c0_37 = arith.constant 0 : index
        %78 = vector.load %arg5[%c0_35, %c0_36, %c0_37] : memref<1x1x128xf32, #tpu.memory_space<vmem>>, vector<1x1x128xf32>
        tpu.vector_store %arg5[%c0_35, %c0_36, %c0_37], %77 {strides = array<i32>} : memref<1x1x128xf32, #tpu.memory_space<vmem>>, vector<1x1x128xf32>,
      } else {
      }
    } else {
    }
    return
  }
  func.func @transform_0(%arg0: i32, %arg1: i32, %arg2: i32) -> (i32, i32, i32) {
    %c0_i32 = arith.constant 0 : i32
    %c0_i32_0 = arith.constant 0 : i32
    return %arg0, %c0_i32, %arg2 : i32, i32, i32
  }
  func.func @transform_1(%arg0: i32, %arg1: i32, %arg2: i32) -> (i32, i32, i32) {
    %c0_i32 = arith.constant 0 : i32
    %c0_i32_0 = arith.constant 0 : i32
    return %arg0, %c0_i32, %arg2 : i32, i32, i32
  }
  func.func @transform_2(%arg0: i32, %arg1: i32, %arg2: i32) -> (i32, i32, i32) {
    %c0_i32 = arith.constant 0 : i32
    %c0_i32_0 = arith.constant 0 : i32
    %c0_i32_1 = arith.constant 0 : i32
    return %arg0, %c0_i32, %c0_i32_0 : i32, i32, i32
  }
}

</mosaic_0001>

<bundles_post_ra>
// kernel: tpu_custom_call.1
= control target key start
LH: loop header
LB: loop body
LE: loop exit
PB: predicated region body
PF: predicated region fallthrough
CT: control target
= control target key end

     0   :  { %7 = vsyncpa [#allocation8], 0  ;;  %s2849_s0 = inlined_call_operand.hbm [shape: f32[2,4,256], index: 0, kind: input, shape index: {}]   ;;  %s2850_s1 = inlined_call_operand.hbm [shape: s32[2,1,256], index: 1, kind: input, shape index: {}]   ;;  %s2851_s2 = inlined_call_operand.hbm [shape: f32[2,1,128], index: 2, kind: output, shape index: {}]  }
   0x1   :  { %9 = vsyncpa [#allocation8 + $0x1], 0 }
   0x2   :  { %10 = vsyncpa [#allocation11], 0 }
   0x3   :  { %12 = vsyncpa [#allocation11 + $0x1], 0 }
   0x4   :  { %13 = vsyncpa [#allocation9], 0 }
   0x5   :  { %15 = vsyncpa [#allocation9 + $0x1], 0  ;;  %s1759_s9 = smov 0   ;;  %s1761_s10 = smov 0  }
   0x6   :  { %s1763_s11 = smov 0   ;;  %s1765_s12 = smov 0  }
   0x7   :  { %s1767_s13 = smov 0   ;;  %s1769_s14 = smov 0  }
   0x8   :  { %s1771_s15 = smov 0   ;;  %s1773_s16 = smov 0  }
   0x9 LB: > { %s1168_s17 = sadd.s32 4294967295, %s1730_s16   ;;  %s1169_s18 = sadd.s32 4294967294, %s1730_s16   ;;  %s1730_s16 = sphi %s1773_s16, %s21_s16   ;;  %s1726_s15 = sphi %s1771_s15, %s3015_s15   ;;  %s1722_s14 = sphi %s1769_s14, %s3014_s14   ;;  %s1718_s13 = sphi %s1767_s13, %s3013_s13   ;;  %s1714_s12 = sphi %s1765_s12, %s3012_s12   ;;  %s1710_s11 = sphi %s1763_s11, %s3011_s11   ;;  %s1706_s10 = sphi %s1761_s10, %s3010_s10   ;;  %s1702_s9 = sphi %s1759_s9, %s3009_s9  }
   0xa   : > { %s36_s19 = sadd.s32 1, %s1722_s14  ;;  %s40_s20 = sadd.s32 1, %s1726_s15 }
   0xb   : > { %p38_p0 = scmp.ge.s32.totalorder %s36_s19, 2  ;;  %s49_s21 = sadd.s32 1, %s1710_s11 }
   0xc   : > { %p56_p1 = scmp.ne.s32.totalorder %s1710_s11, %s1706_s10  ;;  %p57_p2 = scmp.eq.s32.totalorder %s1730_s16, 0 }
   0xd   : > { %s3017_s19 = smov (%p38_p0, %s36_s19), 0  ;;  %s3019_s20 = smov (!%p38_p0, %s40_s20), %s1726_s15 }
   0xe   : > { %p1810_p3 = por %p57_p2, %p56_p1  ;;  %p62_p4 = scmp.ne.s32.totalorder %s1706_s10, %s1702_s9 }
   0xf   : > { %p42_p5 = scmp.ge.s32.totalorder %s3019_s20, 2  ;;  %p63_p6 = scmp.eq.s32.totalorder %s1168_s17, 0 }
  0x10   : > { %p114_p7 = scmp.eq.s32.totalorder %s1168_s17, 3  ;;  %p120_p8 = scmp.eq.s32.totalorder %s1169_s18, 3 }
  0x11   : > { %s3021_s20 = smov (%p42_p5, %s3019_s20), 0  ;;  %p1818_p9 = por %p63_p6, %p62_p4 }
  0x12   : > { %p1822_p10 = por %p114_p7, %p56_p1  ;;  %s44_s25 = ssub.s32 %s1726_s15, %s3021_s20 }
  0x13   : > { %s2865_s23 = scalar_select %p1818_p9, 1, 0 }
  0x14   : > { %s2866_s24 = scalar_select %p1822_p10, 1, 0 }
  0x15   : > { %p1828_p11 = por %p120_p8, %p62_p4  ;;  %p47_p12 = scmp.eq.s32.totalorder %s44_s25, 0 }
  0x16   : > { %p1483_p13 = scmp.lt.s32.totalorder %s1730_s16, 4  ;;  %s1834_s27 = sand.u32 1, %s1710_s11  }
  0x17   : > { %s2867_s26 = scalar_select %p1828_p11, 1, 0 }
  0x18   : > { %s1837_s28 = scalar_select %p47_p12, %s1710_s11, %s49_s21  }
  0x19   : > { %s1172_s29 = sshll.u32 %s1834_s27, 3  ;;  %s1458_s30 = sshll.u32 %s1726_s15, 7 }
  0x1a   : > { %s1844_s5 = scalar_lea.hbm %s2849_s0, %s1458_s30  ;;  %s144_s6 = scalar_lea.vmem [#allocation7], %s1172_s29 }
  0x1b   : > { %s154_s7 = sshll.u32 %s144_s6, 4  ;;  %p1850_p0 = pnand %p1483_p13, %p1810_p3  ;;  %s1846_s7 = int_to_ptr.vmem [resolvable:$true] %s154_s7 }
  0x1c   : > { %s141_s17 = scalar_lea.sflag [#allocation8], %s1834_s27  ;;  %s1568_s18 = scalar_lea.hbm %s1844_s5, 128 }
  0x1d   : > { %p1569_p4 = scmp.ne.s32.totalorder %s1844_s5, %s1568_s18  ;;  %p1570_p5 = pneg %p1850_p0 }
  0x1e   : > { %s1573_s22 = scalar_lea.hbm %s2849_s0, 256  ;;  %p1574_p3 = scmp.lt.u32.totalorder %s1844_s5, %s2849_s0 }
  0x1f   : > { %p1571_p6 = pnand %p1570_p5, %p1569_p4  ;;  %p1575_p8 = scmp.lt.u32.totalorder %s1573_s22, %s1568_s18 }
  0x20   : > { %p1577_p13 = scmp.lt.u32.totalorder %s1568_s18, %s1844_s5 }
  0x21   : > { %p1572_p7 = pneg %p1571_p6  ;;  %p1576_p12 = por %p1575_p8, %p1574_p3 }
  0x23   : > { %p1578_p1 = por %p1577_p13, %p1576_p12 }
  0x25   : > { %p1579_p2 = pnand %p1578_p1, %p1572_p7 }
  0x27   : > { %1582 = shalt.err (!%p1579_p2)
}
  0x28   : > { %s1583_s3 = scalar_lea.vmem %s1846_s7, 128  ;;  %s1732_s4 = smov [#allocation7]  }
  0x29   : > { %p1584_p4 = scmp.ne.s32.totalorder %s1846_s7, %s1583_s3  ;;  %s1588_s6 = sshll.u32 %s1732_s4, 4  ;;  %s1589_s6 = int_to_ptr.vmem [resolvable:$false] %s1588_s6 }
  0x2a   : > { %s1590_s21 = scalar_lea.vmem %s1589_s6, 256  ;;  %p1591_p10 = scmp.lt.s32.totalorder %s1846_s7, %s1589_s6 }
  0x2b   : > { %p1586_p6 = pnand %p1584_p4, %p1570_p5  ;;  %p1592_p3 = scmp.lt.s32.totalorder %s1590_s21, %s1583_s3 }
  0x2d   : > { %p1587_p11 = pneg %p1586_p6  ;;  %p1593_p8 = por %p1592_p3, %p1591_p10 }
  0x2f   : > { %p1594_p12 = pnand %p1593_p8, %p1587_p11 }
  0x31   : > { %1597 = shalt.err (!%p1594_p12)
}
  0x32   : > { %1475 = dma.hbm_to_vmem [thread:$0]  (!%p1850_p0), %s1844_s5, 128, %s1846_s7, %s141_s17  }
  0x33   : > { %p2869_p1 = scmp.lt.s32.totalorder %s1730_s16, 5  ;;  %p2870_p2 = scmp.ge.s32.totalorder %s1730_s16, 1 }
  0x34   : > { %s1175_s25 = sshll.u32 %s1834_s27, 1  ;;  %s1459_s22 = sshll.u32 %s1726_s15, 5 }
  0x35   : > { %p1886_p7 = pnand %p2870_p2, %p2869_p1  ;;  %s1895_s3 = scalar_lea.hbm %s2850_s1, %s1459_s22 }
  0x36   : > { %s165_s4 = scalar_lea.vmem [#allocation10], %s1175_s25  ;;  %s162_s5 = scalar_lea.sflag [#allocation11], %s1834_s27 }
  0x37   : > { %s2871_s18 = scalar_select %p1886_p7, 1, 0 }
  0x38   : > { %s175_s6 = sshll.u32 %s165_s4, 4  ;;  %s1598_s7 = scalar_lea.hbm %s1895_s3, 32  ;;  %s176_s6 = int_to_ptr.vmem [resolvable:$true] %s175_s6 }
  0x39   : > { %p1599_p10 = scmp.ne.s32.totalorder %s1895_s3, %s1598_s7  ;;  %s1603_s29 = scalar_lea.hbm %s2850_s1, 64 }
  0x3a   : > { %p1604_p4 = scmp.lt.u32.totalorder %s1895_s3, %s2850_s1  ;;  %p1605_p6 = scmp.lt.u32.totalorder %s1603_s29, %s1598_s7 }
  0x3b   : > { %p1601_p11 = pnand %p1599_p10, %p1570_p5  ;;  %p1607_p8 = scmp.lt.u32.totalorder %s1598_s7, %s1895_s3 }
  0x3c   : > { %p1606_p3 = por %p1605_p6, %p1604_p4 }
  0x3d   : > { %p1602_p13 = pneg %p1601_p11 }
  0x3e   : > { %p1608_p12 = por %p1607_p8, %p1606_p3 }
  0x40   : > { %p1609_p1 = pnand %p1608_p12, %p1602_p13 }
  0x42   : > { %1612 = shalt.err (!%p1609_p1)
}
  0x43   : > { %s1613_s27 = scalar_lea.vmem %s176_s6, 32  ;;  %s1733_s25 = smov [#allocation10]  }
  0x44   : > { %p1614_p2 = scmp.ne.s32.totalorder %s176_s6, %s1613_s27  ;;  %s1618_s4 = sshll.u32 %s1733_s25, 4  ;;  %s1619_s4 = int_to_ptr.vmem [resolvable:$false] %s1618_s4 }
  0x45   : > { %s1620_s17 = scalar_lea.vmem %s1619_s4, 64  ;;  %p1621_p9 = scmp.lt.s32.totalorder %s176_s6, %s1619_s4 }
  0x46   : > { %p1616_p10 = pnand %p1614_p2, %p1570_p5  ;;  %p1622_p7 = scmp.lt.s32.totalorder %s1620_s17, %s1613_s27 }
  0x48   : > { %p1617_p11 = pneg %p1616_p10  ;;  %p1623_p4 = por %p1622_p7, %p1621_p9 }
  0x4a   : > { %p1624_p6 = pnand %p1623_p4, %p1617_p11 }
  0x4c   : > { %1627 = shalt.err (!%p1624_p6)
}
  0x4d   : > { %1478 = dma.hbm_to_vmem [thread:$0]  (!%p1850_p0), %s1895_s3, 32, %s176_s6, %s162_s5  }
  0x4e   : > { %p2872_p13 = scmp.ne.s32.totalorder %s2871_s18, 0 }
  0x4f   : > { %s1920_s7 = sand.u32 (!%p2872_p13), 1, %s1706_s10   ;;  %p2873_p5 = scmp.ne.s32.totalorder (!%p2872_p13), %s2865_s23, 0 }
  0x50   : > { %184 = sbr.rel (%p2872_p13) target bundleno = 1088 (0x440), region = 28  ;;  %s1179_s21 = sshll.u32 (!%p2872_p13), %s1920_s7, 3 }
  0x51   : > { %s187_s29 = scalar_lea.sflag (!%p2872_p13), [#allocation8], %s1920_s7  ;;  %s190_s22 = scalar_lea.vmem (!%p2872_p13), [#allocation7], %s1179_s21 }
  0x57   : > { %1689 = dma.done.wait (%p2873_p5), %s187_s29, 128  }
  0x58   : > { %1691 = vsyncadd (%p2873_p5), %s187_s29, 4294967168  ;;  %s1180_s8 = sshll.u32 %s1920_s7, 1  ;;  %s196_s18 = scalar_lea.sflag [#allocation11], %s1920_s7 }
  0x59   : > { %s199_s3 = scalar_lea.vmem [#allocation10], %s1180_s8 }
  0x5a   : > { %1693 = dma.done.wait (%p2873_p5), %s196_s18, 32  }
  0x5b   : > { %1695 = vsyncadd (%p2873_p5), %s196_s18, 4294967264  ;;  %v280_v0 = vlaneseq  ;;  %vm2854_vm0 = vcmask 1043456   ;;  %v1958_v9 = vld [vmem:[%s190_s22] sm:$0xff]  ;;  %v1960_v10 = vld [vmem:[%s199_s3] sm:$0x3]  ;;  %v1734_v59 = vmov 0.0  }
  0x5c   : > { %v230_v14 = vcombine.high %v1958_v9, %v1958_v9  ;;  %v233_v15 = vsel %vm2854_vm0, %v1958_v9, -inf  ;;  %vm278_vm1 = vcmp.eq.s32.totalorder %v1960_v10, 255  ;;  %s223_s23 = scalar_lea.vmem [#allocation12], %s1920_s7  ;;  %p1247_p9 = scmp.ne.s32.totalorder %s1714_s12, 0 }
  0x5d   : > { %v1935_v1 = vshrl.u32 %v280_v0, 7  ;;  %v234_v17 = vrot.slane %v233_v15, 4  ;;  %v279_v22 = vsel %vm278_vm1, 256, %v1960_v10 }
  0x5e   : > { %v240_v21 = vsel %vm2854_vm0, %v230_v14, -inf }
  0x5f   : > { %v1938_v2 = vadd.s32 8, %v1935_v1  ;;  %v1941_v3 = vadd.s32 16, %v1935_v1  ;;  %v1944_v4 = vadd.s32 24, %v1935_v1  ;;  %v1947_v5 = vadd.s32 32, %v1935_v1 }
  0x60   : > { %v1950_v6 = vadd.s32 40, %v1935_v1  ;;  %v1953_v7 = vadd.s32 48, %v1935_v1  ;;  %v1956_v8 = vadd.s32 56, %v1935_v1  ;;  %v1963_v11 = vadd.s32 64, %v1935_v1 }
  0x61   : > { %v1966_v12 = vadd.s32 72, %v1935_v1  ;;  %v1969_v13 = vadd.s32 80, %v1935_v1  ;;  %v1977_v16 = vadd.s32 88, %v1935_v1  ;;  %v1980_v18 = vadd.s32 96, %v1935_v1 }
  0x62   : > { %v1983_v19 = vadd.s32 104, %v1935_v1  ;;  %v1986_v20 = vadd.s32 112, %v1935_v1  ;;  %v1991_v23 = vadd.s32 120, %v1935_v1  ;;  %v1994_v24 = vadd.s32 128, %v1935_v1 }
  0x63   : > { %v235_v25 = vmax.f32 %v233_v15, %v234_v17  ;;  %v241_v26 = vrot.slane %v240_v21, 4  ;;  %v1997_v27 = vadd.s32 136, %v1935_v1  ;;  %v2000_v28 = vadd.s32 144, %v1935_v1 }
  0x64   : > { %v2003_v29 = vadd.s32 152, %v1935_v1  ;;  %v2006_v30 = vadd.s32 160, %v1935_v1  ;;  %v2009_v31 = vadd.s32 168, %v1935_v1  ;;  %v2012_v32 = vadd.s32 176, %v1935_v1 }
  0x65   : > { %v236_v33 = vrot.slane %v235_v25, 2  ;;  %v242_v34 = vmax.f32 %v240_v21, %v241_v26  ;;  %v2015_v35 = vadd.s32 184, %v1935_v1  ;;  %v2018_v36 = vadd.s32 192, %v1935_v1 }
  0x66   : > { %v2021_v37 = vadd.s32 200, %v1935_v1  ;;  %v2024_v38 = vadd.s32 208, %v1935_v1  ;;  %v2027_v39 = vadd.s32 216, %v1935_v1  ;;  %v2030_v40 = vsub.s32 0, %v1935_v1 }
  0x67   : > { %v237_v41 = vmax.f32 %v235_v25, %v236_v33  ;;  %v243_v42 = vrot.slane %v242_v34, 2  ;;  %v2033_v43 = vadd.s32 224, %v1935_v1  ;;  %v2036_v44 = vsub.s32 1, %v1935_v1 }
  0x68   : > { %v2039_v45 = vadd.s32 232, %v1935_v1  ;;  %v2042_v46 = vadd.s32 240, %v1935_v1  ;;  %v2045_v47 = vadd.s32 248, %v1935_v1  ;;  %v2048_v48 = vrot.slane %v279_v22, %v2030_v40 }
  0x69   : > { %v238_v49 = vrot.slane %v237_v41, 1  ;;  %v244_v50 = vmax.f32 %v242_v34, %v243_v42  ;;  %v2051_v51 = vadd.s32 256, %v1935_v1  ;;  %v2054_v52 = vrot.slane %v279_v22, %v2036_v44 }
  0x6a   : > { %vm2861_vm2 = vcmp.eq.s32.totalorder %v1935_v1, %v2048_v48  ;;  %vm2856_vm3 = vcmp.eq.s32.totalorder %v1938_v2, %v2048_v48  ;;  %vm2860_vm4 = vcmp.eq.s32.totalorder %v1941_v3, %v2048_v48  ;;  %vm2859_vm5 = vcmp.eq.s32.totalorder %v1944_v4, %v2048_v48 }
  0x6b   : > { %v239_v53 = vmax.f32 %v237_v41, %v238_v49  ;;  %v245_v54 = vrot.slane %v244_v50, 1  ;;  %vm2862_vm6 = vcmp.eq.s32.totalorder %v1935_v1, %v2054_v52  ;;  %vm2855_vm7 = vcmp.eq.s32.totalorder %v1938_v2, %v2054_v52 }
  0x6c   : > { %vm2858_vm8 = vcmp.eq.s32.totalorder %v1941_v3, %v2054_v52  ;;  %vm2857_vm9 = vcmp.eq.s32.totalorder %v1944_v4, %v2054_v52  ;;  %vm381_vm13 = vcmp.eq.s32.totalorder %v2039_v45, %v2054_v52  ;;  %vm383_vm15 = vcmp.eq.s32.totalorder %v2042_v46, %v2054_v52 }
  0x6d   : > { %v246_v55 = vmax.f32 %v244_v50, %v245_v54  ;;  %vm385_vm10 = vcmp.eq.s32.totalorder %v2045_v47, %v2054_v52  ;;  %vm386_vm11 = vcmp.eq.s32.totalorder %v2051_v51, %v2048_v48  ;;  %vm387_vm12 = vcmp.eq.s32.totalorder %v2051_v51, %v2054_v52 }
  0x6e   : > { %v2192_v60 = vsel %vm386_vm11, 1.0, %v1734_v59  ;;  %v2197_v61 = vsel %vm387_vm12, 1.0, %v1734_v59  ;;  %v1735_v59 = vmov (!%p1247_p9), 1.0|1.0   ;;  %vm2222_vm1 = vmpackc.low (!%p1247_p9), %vm387_vm12, %vm387_vm12  ;;  %vm2900_vm14 = vcmp.eq.s32.totalorder (!%p1247_p9), %v1969_v13, %v2054_v52 }
  0x6f   : > { %v249_v56 = vcombine.low %v239_v53, %v246_v55  ;;  %v552_v62 = vpack.c.bf16 %v2192_v60, %v2192_v60  ;;  %v553_v63 = vpack.c.bf16 %v2197_v61, %v2197_v61  ;;  %1313 = vmatprep.subr.msk.bf16.mxu1 (!%p1247_p9), %vm2222_vm1, %v1735_v59  ;;  %vm2246_vm12 = vmpackc.low (!%p1247_p9), %vm386_vm11, %vm386_vm11 }
  0x70   : > { %1315 = vmatpush1.bf16.xpose.msk.msra.mxu1 (!%p1247_p9), %vm2246_vm12, %v1735_v59  ;;  %vm2277_vm11 = vmpackc.low (!%p1247_p9), %vm2859_vm5, %vm2860_vm4  ;;  %vm2863_vm5 = vcmask (!%p1247_p9), 60416   ;;  %vm2296_vm4 = vcmp.lt.s32.totalorder (!%p1247_p9), %v280_v0, 264  ;;  %v1737_v0 = vmov (!%p1247_p9), 1065369472  }
  0x71   : > { %v251_v57 = vsub.f32 %v1958_v9, %v249_v56 }
  0x73   : > { %v252_v58 = vmul.f32 1.442695, %v251_v57 }
  0x75   : > { %1559 = vpow2.f32 %v252_v58 }
  0x7f   : > { %v1560_v9 = vpop.eup %1559 }
  0x80   : > { %v255_v14 = vcombine.high %v1560_v9, %v1560_v9  ;;  %v257_v15 = vsel %vm2854_vm0, %v1560_v9, 0.0 }
  0x81   : > { %v258_v17 = vrot.slane %v257_v15, 4 }
  0x82   : > { %v264_v21 = vsel %vm2854_vm0, %v255_v14, 0.0  ;;  %vm1248_vm0 = vmpackc.low (!%p1247_p9), %vm2855_vm7, %vm2862_vm6  ;;  %vm2893_vm6 = vcmp.eq.s32.totalorder (!%p1247_p9), %v1956_v8, %v2054_v52 }
  0x83   : > { %v259_v22 = vadd.f32 %v258_v17, %v257_v15  ;;  %v265_v25 = vrot.slane %v264_v21, 4  ;;  %1249 = vmatprep.subr.msk.bf16.mxu0 (!%p1247_p9), %vm1248_vm0, %v1735_v59  ;;  %vm2235_vm7 = vmpackc.low (!%p1247_p9), %vm2856_vm3, %vm2861_vm2  ;;  %1317 = vmatprep.subr.msk.bf16.mxu1 (!%p1247_p9), %vm1248_vm0, %v1735_v59  ;;  %vm2885_vm0 = vcmp.eq.s32.totalorder (!%p1247_p9), %v1950_v6, %v2054_v52  ;;  %vm2892_vm2 = vcmp.eq.s32.totalorder (!%p1247_p9), %v1953_v7, %v2054_v52 }
  0x84   : > { %1251 = vmatpush1.bf16.xpose.msk.msra.mxu0 (!%p1247_p9), %vm2235_vm7, %v1735_v59  ;;  %vm2259_vm3 = vmpackc.low (!%p1247_p9), %vm2857_vm9, %vm2858_vm8  ;;  %vm2884_vm9 = vcmp.eq.s32.totalorder (!%p1247_p9), %v1947_v5, %v2054_v52 }
  0x85   : > { %v260_v26 = vrot.slane %v259_v22, 2  ;;  %v266_v33 = vadd.f32 %v265_v25, %v264_v21  ;;  %1253 = vmatprep.subr.msk.bf16.mxu0 (!%p1247_p9), %vm2259_vm3, %v1735_v59  ;;  %vm2287_vm8 = vmpackc.low (!%p1247_p9), %vm2885_vm0, %vm2884_vm9  ;;  %vm2891_vm9 = vcmp.eq.s32.totalorder (!%p1247_p9), %v1950_v6, %v2048_v48 }
  0x87   : > { %v261_v34 = vadd.f32 %v260_v26, %v259_v22  ;;  %v267_v41 = vrot.slane %v266_v33, 2 }
  0x89   : > { %v262_v42 = vrot.slane %v261_v34, 1  ;;  %v268_v49 = vadd.f32 %v267_v41, %v266_v33  ;;  %v1736_v33 = vmov (!%p1247_p9), 0.0  }
  0x8a   : > { %564 = vst.msk [vmem:[#allocation2 + $0x8] sm:$0xf] (!%p1247_p9), %vm2863_vm5, %v1736_v33  ;;  %vm1260_vm5 = vmpackc.low (!%p1247_p9), %vm2893_vm6, %vm2892_vm2  ;;  %vm2896_vm2 = vcmp.eq.s32.totalorder (!%p1247_p9), %v1963_v11, %v2054_v52  ;;  %vm2897_vm6 = vcmp.eq.s32.totalorder (!%p1247_p9), %v1966_v12, %v2054_v52 }
  0x8b   : > { %v263_v50 = vadd.f32 %v262_v42, %v261_v34  ;;  %v269_v53 = vrot.slane %v268_v49, 1  ;;  %569 = vst.msk [vmem:[#allocation3] sm:$0x7] (!%p1247_p9), %vm2296_vm4, %v1736_v33 }
  0x8c   : > { %1255 = vmatpush1.bf16.xpose.msk.msra.mxu0 (!%p1247_p9), %vm2277_vm11, %v1735_v59 }
  0x8d   : > { %v270_v54 = vadd.f32 %v269_v53, %v268_v49  ;;  %1257 = vmatprep.subr.msk.bf16.mxu0 (!%p1247_p9), %vm2287_vm8, %v1735_v59 }
  0x8f   : > { %v273_v55 = vcombine.low %v263_v50, %v270_v54  ;;  %v1738_v54 = vmov (!%p1247_p9), 1966171168  }
  0x91   : > { %1561 = vrcp.f32 %v273_v55  ;;  %v571_v34 = vld [vmem:[#allocation2 + $0x8] sm:$0xf] (!%p1247_p9)  ;;  %v754_v55 = vunpack.c.l.s4 (!%p1247_p9), %v1738_v54 }
  0x92   : > { %v667_v54 = vld [vmem:[#allocation3] sm:$0x7] (!%p1247_p9) }
  0x96   : > { %557 = sbr.rel (%p1247_p9) target bundleno = 515 (0x203), region = 40 }
  0x9b   : > { %v1562_v56 = vpop.eup %1561 }
  0x9c   : > { %v2205_v57 = vmul.f32 %v1562_v56, %v1560_v9 }
  0x9e   : > { %v573_v58 = vcombine.high %v2205_v57, %v2205_v57  ;;  %v2269_v51 = vpack.c.bf16 %v2205_v57, %v2205_v57 }
  0xa0   : > { %v576_v15 = vpack.c.bf16 %v573_v58, %v573_v58 }
  0xa2   : > { %650 = vmatprep.mubr.bf16.mxu1 %v576_v15  ;;  %609 = vmatprep.mubr.bf16.mxu0 %v576_v15 }
  0xa3   : > { %651 = vmatmul.mubr.bf16.vlgmr.msra.gmra.mrb[0].mxu1 %v2269_v51 }
  0xa4   : > { %1319 = vmatpush1.bf16.xpose.msk.msra.mxu1 %vm2235_vm7, %v1735_v59  ;;  %700 = vmatprep.mubr.bf16.mxu1 %v1737_v0  ;;  %vm2890_vm7 = vcmp.eq.s32.totalorder %v1947_v5, %v2048_v48 }
  0xa5   : > { %1321 = vmatprep.subr.msk.bf16.mxu1 %vm2259_vm3, %v1735_v59  ;;  %vm1258_vm0 = vmpackc.low %vm2891_vm9, %vm2890_vm7  ;;  %vm2894_vm3 = vcmp.eq.s32.totalorder %v1953_v7, %v2048_v48  ;;  %vm2895_vm7 = vcmp.eq.s32.totalorder %v1956_v8, %v2048_v48 }
  0xa6   : > { %1259 = vmatpush1.bf16.xpose.msk.msra.mxu0 %vm1258_vm0, %v1735_v59  ;;  %vm1262_vm9 = vmpackc.low %vm2895_vm7, %vm2894_vm3  ;;  %vm2899_vm3 = vcmp.eq.s32.totalorder %v1966_v12, %v2048_v48 }
  0xa7   : > { %1261 = vmatprep.subr.msk.bf16.mxu0 %vm1260_vm5, %v1735_v59 }
  0xac   : > { %1323 = vmatpush1.bf16.xpose.msk.msra.mxu1 %vm2277_vm11, %v1735_v59  ;;  %vm1264_vm11 = vmpackc.low %vm2897_vm6, %vm2896_vm2  ;;  %vm2901_vm2 = vcmp.eq.s32.totalorder %v1977_v16, %v2054_v52 }
  0xad   : > { %1325 = vmatprep.subr.msk.bf16.mxu1 %vm2287_vm8, %v1735_v59  ;;  %vm2898_vm8 = vcmp.eq.s32.totalorder %v1963_v11, %v2048_v48  ;;  %vm1268_vm6 = vmpackc.low %vm2901_vm2, %vm2900_vm14  ;;  %vm2905_vm14 = vcmp.eq.s32.totalorder %v1983_v19, %v2054_v52 }
  0xae   : > { %1263 = vmatpush1.bf16.xpose.msk.msra.mxu0 %vm1262_vm9, %v1735_v59  ;;  %vm1266_vm7 = vmpackc.low %vm2899_vm3, %vm2898_vm8  ;;  %vm2904_vm3 = vcmp.eq.s32.totalorder %v1980_v18, %v2054_v52 }
  0xaf   : > { %1265 = vmatprep.subr.msk.bf16.mxu0 %vm1264_vm11, %v1735_v59  ;;  %vm1272_vm2 = vmpackc.low %vm2905_vm14, %vm2904_vm3  ;;  %vm2909_vm3 = vcmp.eq.s32.totalorder %v1991_v23, %v2054_v52 }
  0xb4   : > { %1327 = vmatpush1.bf16.xpose.msk.msra.mxu1 %vm1258_vm0, %v1735_v59  ;;  %vm2903_vm0 = vcmp.eq.s32.totalorder %v1977_v16, %v2048_v48 }
  0xb5   : > { %1329 = vmatprep.subr.msk.bf16.mxu1 %vm1260_vm5, %v1735_v59  ;;  %vm2902_vm5 = vcmp.eq.s32.totalorder %v1969_v13, %v2048_v48 }
  0xb6   : > { %1267 = vmatpush1.bf16.xpose.msk.msra.mxu0 %vm1266_vm7, %v1735_v59  ;;  %vm1270_vm8 = vmpackc.low %vm2903_vm0, %vm2902_vm5  ;;  %vm2908_vm0 = vcmp.eq.s32.totalorder %v1986_v20, %v2054_v52 }
  0xb7   : > { %1269 = vmatprep.subr.msk.bf16.mxu0 %vm1268_vm6, %v1735_v59  ;;  %vm1276_vm14 = vmpackc.low %vm2909_vm3, %vm2908_vm0  ;;  %vm2913_vm0 = vcmp.eq.s32.totalorder %v1997_v27, %v2054_v52 }
  0xbc   : > { %1331 = vmatpush1.bf16.xpose.msk.msra.mxu1 %vm1262_vm9, %v1735_v59  ;;  %vm2906_vm9 = vcmp.eq.s32.totalorder %v1980_v18, %v2048_v48 }
  0xbd   : > { %1333 = vmatprep.subr.msk.bf16.mxu1 %vm1264_vm11, %v1735_v59  ;;  %vm2907_vm11 = vcmp.eq.s32.totalorder %v1983_v19, %v2048_v48 }
  0xbe   : > { %1271 = vmatpush1.bf16.xpose.msk.msra.mxu0 %vm1270_vm8, %v1735_v59  ;;  %vm1274_vm5 = vmpackc.low %vm2907_vm11, %vm2906_vm9  ;;  %vm2912_vm11 = vcmp.eq.s32.totalorder %v1994_v24, %v2054_v52 }
  0xbf   : > { %1273 = vmatprep.subr.msk.bf16.mxu0 %vm1272_vm2, %v1735_v59  ;;  %vm1280_vm3 = vmpackc.low %vm2913_vm0, %vm2912_vm11  ;;  %vm2917_vm11 = vcmp.eq.s32.totalorder %v2003_v29, %v2054_v52 }
  0xc4   : > { %1335 = vmatpush1.bf16.xpose.msk.msra.mxu1 %vm1266_vm7, %v1735_v59  ;;  %vm2910_vm7 = vcmp.eq.s32.totalorder %v1986_v20, %v2048_v48 }
  0xc5   : > { %1337 = vmatprep.subr.msk.bf16.mxu1 %vm1268_vm6, %v1735_v59  ;;  %vm2911_vm6 = vcmp.eq.s32.totalorder %v1991_v23, %v2048_v48 }
  0xc6   : > { %1275 = vmatpush1.bf16.xpose.msk.msra.mxu0 %vm1274_vm5, %v1735_v59  ;;  %vm1278_vm9 = vmpackc.low %vm2911_vm6, %vm2910_vm7  ;;  %vm2916_vm6 = vcmp.eq.s32.totalorder %v2000_v28, %v2054_v52 }
  0xc7   : > { %1277 = vmatprep.subr.msk.bf16.mxu0 %vm1276_vm14, %v1735_v59  ;;  %vm1284_vm0 = vmpackc.low %vm2917_vm11, %vm2916_vm6  ;;  %vm2921_vm6 = vcmp.eq.s32.totalorder %v2009_v31, %v2054_v52 }
  0xcc   : > { %1339 = vmatpush1.bf16.xpose.msk.msra.mxu1 %vm1270_vm8, %v1735_v59  ;;  %vm2914_vm8 = vcmp.eq.s32.totalorder %v1994_v24, %v2048_v48 }
  0xcd   : > { %1341 = vmatprep.subr.msk.bf16.mxu1 %vm1272_vm2, %v1735_v59  ;;  %vm2915_vm2 = vcmp.eq.s32.totalorder %v1997_v27, %v2048_v48 }
  0xce   : > { %1279 = vmatpush1.bf16.xpose.msk.msra.mxu0 %vm1278_vm9, %v1735_v59  ;;  %vm1282_vm7 = vmpackc.low %vm2915_vm2, %vm2914_vm8  ;;  %vm2920_vm2 = vcmp.eq.s32.totalorder %v2006_v30, %v2054_v52 }
  0xcf   : > { %1281 = vmatprep.subr.msk.bf16.mxu0 %vm1280_vm3, %v1735_v59  ;;  %vm1288_vm11 = vmpackc.low %vm2921_vm6, %vm2920_vm2  ;;  %vm2925_vm2 = vcmp.eq.s32.totalorder %v2015_v35, %v2054_v52 }
  0xd4   : > { %1343 = vmatpush1.bf16.xpose.msk.msra.mxu1 %vm1274_vm5, %v1735_v59  ;;  %vm2918_vm5 = vcmp.eq.s32.totalorder %v2000_v28, %v2048_v48 }
  0xd5   : > { %1345 = vmatprep.subr.msk.bf16.mxu1 %vm1276_vm14, %v1735_v59  ;;  %vm2919_vm14 = vcmp.eq.s32.totalorder %v2003_v29, %v2048_v48 }
  0xd6   : > { %1283 = vmatpush1.bf16.xpose.msk.msra.mxu0 %vm1282_vm7, %v1735_v59  ;;  %vm1286_vm8 = vmpackc.low %vm2919_vm14, %vm2918_vm5  ;;  %vm2924_vm14 = vcmp.eq.s32.totalorder %v2012_v32, %v2054_v52 }
  0xd7   : > { %1285 = vmatprep.subr.msk.bf16.mxu0 %vm1284_vm0, %v1735_v59  ;;  %vm1292_vm6 = vmpackc.low %vm2925_vm2, %vm2924_vm14  ;;  %vm2929_vm14 = vcmp.eq.s32.totalorder %v2021_v37, %v2054_v52 }
  0xdc   : > { %1347 = vmatpush1.bf16.xpose.msk.msra.mxu1 %vm1278_vm9, %v1735_v59  ;;  %vm2922_vm9 = vcmp.eq.s32.totalorder %v2006_v30, %v2048_v48 }
  0xdd   : > { %1349 = vmatprep.subr.msk.bf16.mxu1 %vm1280_vm3, %v1735_v59  ;;  %vm2923_vm3 = vcmp.eq.s32.totalorder %v2009_v31, %v2048_v48 }
  0xde   : > { %1287 = vmatpush1.bf16.xpose.msk.msra.mxu0 %vm1286_vm8, %v1735_v59  ;;  %vm1290_vm5 = vmpackc.low %vm2923_vm3, %vm2922_vm9  ;;  %vm2928_vm3 = vcmp.eq.s32.totalorder %v2018_v36, %v2054_v52 }
  0xdf   : > { %1289 = vmatprep.subr.msk.bf16.mxu0 %vm1288_vm11, %v1735_v59  ;;  %vm1296_vm2 = vmpackc.low %vm2929_vm14, %vm2928_vm3  ;;  %vm2933_vm3 = vcmp.eq.s32.totalorder %v2027_v39, %v2054_v52 }
  0xe4   : > { %1351 = vmatpush1.bf16.xpose.msk.msra.mxu1 %vm1282_vm7, %v1735_v59  ;;  %vm2926_vm7 = vcmp.eq.s32.totalorder %v2012_v32, %v2048_v48 }
  0xe5   : > { %1353 = vmatprep.subr.msk.bf16.mxu1 %vm1284_vm0, %v1735_v59  ;;  %vm2927_vm0 = vcmp.eq.s32.totalorder %v2015_v35, %v2048_v48 }
  0xe6   : > { %1291 = vmatpush1.bf16.xpose.msk.msra.mxu0 %vm1290_vm5, %v1735_v59  ;;  %vm1294_vm9 = vmpackc.low %vm2927_vm0, %vm2926_vm7  ;;  %vm2932_vm0 = vcmp.eq.s32.totalorder %v2024_v38, %v2054_v52 }
  0xe7   : > { %1293 = vmatprep.subr.msk.bf16.mxu0 %vm1292_vm6, %v1735_v59  ;;  %vm1300_vm14 = vmpackc.low %vm2933_vm3, %vm2932_vm0 }
  0xec   : > { %1355 = vmatpush1.bf16.xpose.msk.msra.mxu1 %vm1286_vm8, %v1735_v59  ;;  %vm2930_vm8 = vcmp.eq.s32.totalorder %v2018_v36, %v2048_v48 }
  0xed   : > { %1357 = vmatprep.subr.msk.bf16.mxu1 %vm1288_vm11, %v1735_v59  ;;  %vm2931_vm11 = vcmp.eq.s32.totalorder %v2021_v37, %v2048_v48 }
  0xee   : > { %1295 = vmatpush1.bf16.xpose.msk.msra.mxu0 %vm1294_vm9, %v1735_v59  ;;  %vm1298_vm7 = vmpackc.low %vm2931_vm11, %vm2930_vm8  ;;  %vm2936_vm11 = vcmp.eq.s32.totalorder %v2033_v43, %v2054_v52 }
  0xef   : > { %1297 = vmatprep.subr.msk.bf16.mxu0 %vm1296_vm2, %v1735_v59  ;;  %vm1304_vm0 = vmpackc.low %vm381_vm13, %vm2936_vm11 }
  0xf4   : > { %1359 = vmatpush1.bf16.xpose.msk.msra.mxu1 %vm1290_vm5, %v1735_v59  ;;  %vm2934_vm5 = vcmp.eq.s32.totalorder %v2024_v38, %v2048_v48 }
  0xf5   : > { %1361 = vmatprep.subr.msk.bf16.mxu1 %vm1292_vm6, %v1735_v59  ;;  %vm2935_vm6 = vcmp.eq.s32.totalorder %v2027_v39, %v2048_v48 }
  0xf6   : > { %1299 = vmatpush1.bf16.xpose.msk.msra.mxu0 %vm1298_vm7, %v1735_v59  ;;  %vm1302_vm8 = vmpackc.low %vm2935_vm6, %vm2934_vm5 }
  0xf7   : > { %1301 = vmatprep.subr.msk.bf16.mxu0 %vm1300_vm14, %v1735_v59  ;;  %vm1308_vm5 = vmpackc.low %vm385_vm10, %vm383_vm15 }
  0xfc   : > { %1363 = vmatpush1.bf16.xpose.msk.msra.mxu1 %vm1294_vm9, %v1735_v59  ;;  %vm2937_vm9 = vcmp.eq.s32.totalorder %v2033_v43, %v2048_v48 }
  0xfd   : > { %1365 = vmatprep.subr.msk.bf16.mxu1 %vm1296_vm2, %v1735_v59  ;;  %vm2938_vm2 = vcmp.eq.s32.totalorder %v2039_v45, %v2048_v48 }
  0xfe   : > { %1303 = vmatpush1.bf16.xpose.msk.msra.mxu0 %vm1302_vm8, %v1735_v59  ;;  %vm1306_vm3 = vmpackc.low %vm2938_vm2, %vm2937_vm9 }
  0xff   : > { %1305 = vmatprep.subr.msk.bf16.mxu0 %vm1304_vm0, %v1735_v59 }
 0x104   : > { %1367 = vmatpush1.bf16.xpose.msk.msra.mxu1 %vm1298_vm7, %v1735_v59  ;;  %vm2939_vm7 = vcmp.eq.s32.totalorder %v2042_v46, %v2048_v48 }
 0x105   : > { %1369 = vmatprep.subr.msk.bf16.mxu1 %vm1300_vm14, %v1735_v59  ;;  %vm2940_vm14 = vcmp.eq.s32.totalorder %v2045_v47, %v2048_v48 }
 0x106   : > { %1307 = vmatpush1.bf16.xpose.msk.msra.mxu0 %vm1306_vm3, %v1735_v59  ;;  %vm1310_vm6 = vmpackc.low %vm2940_vm14, %vm2939_vm7 }
 0x107   : > { %1309 = vmatprep.subr.msk.bf16.mxu0 %vm1308_vm5, %v1735_v59 }
 0x10c   : > { %1371 = vmatpush1.bf16.xpose.msk.msra.mxu1 %vm1302_vm8, %v1735_v59 }
 0x10d   : > { %1373 = vmatprep.subr.msk.bf16.mxu1 %vm1304_vm0, %v1735_v59 }
 0x10e   : > { %1311 = vmatpush1.bf16.xpose.msk.msra.mxu0 %vm1310_vm6, %v1735_v59 }
 0x10f   : > { %1381 = vmatprep.subr.msk.bf16.mxu0 %vm2222_vm1, %v1735_v59  ;;  %vm2941_vm1 = vcmask 60416  }
 0x114   : > { %1375 = vmatpush1.bf16.xpose.msk.msra.mxu1 %vm1306_vm3, %v1735_v59 }
 0x115   : > { %1377 = vmatprep.subr.msk.bf16.mxu1 %vm1308_vm5, %v1735_v59  ;;  %610 = vmatmul.mubr.bf16.vlgmr.msra.gmra.mrb[0].mxu0 %v2269_v51 }
 0x116   : > { %1383 = vmatpush1.bf16.xpose.msk.msra.mxu0 %vm2246_vm12, %v1735_v59  ;;  %741 = vmatprep.mubr.bf16.mxu0 %v1737_v0 }
 0x11c   : > { %1379 = vmatpush1.bf16.xpose.msk.msra.mxu1 %vm1310_vm6, %v1735_v59  ;;  %v755_v59 = vunpack.c.0.s8 %v754_v55 }
 0x11d   : > { %742 = vmatmul.mubr.bf16.vlgmr.msra.gmra.mrb[4].mxu0 %v1737_v0 }
 0x11e   : > { %v758_v17 = vsub.s32 %v755_v59, %v1935_v1 }
 0x123   : > { %701 = vmatmul.mubr.bf16.vlgmr.msra.gmra.mrb[4].mxu1 %v1737_v0 }
 0x176   : > { %v652_v41 = vpop.f32.mrb[0].mxu1 }
 0x177   : > { %v663_v42 = vadd.f32 %v652_v41, %v571_v34  ;;  %v654_v49 = vpop.f32.mrb[1].mxu1 }
 0x178   : > { %v655_v50 = vpop.f32.mrb[2].mxu1 }
 0x179   : > { %666 = vst.msk [vmem:[#allocation2 + $0x8] sm:$0xf] %vm2941_vm1, %v663_v42  ;;  %v656_v53 = vpop.f32.mrb[3].mxu1 }
 0x1e8   : > { %v611_v56 = vpop.f32.mrb[0].mxu0 }
 0x1e9   : > { %v613_v58 = vpop.f32.mrb[1].mxu0 }
 0x1ea   : > { %v660_v9 = vcombine.low %v611_v56, %v613_v58  ;;  %v615_v14 = vpop.f32.mrb[2].mxu0 }
 0x1eb   : > { %v616_v15 = vpop.f32.mrb[3].mxu0 }
 0x1ec   : > { %664 = vst [vmem:[#allocation2] sm:$0xff] %v660_v9 }
 0x1f0   : > { %v743_v21 = vpop.f32.mrb[4].mxu0 }
 0x1f1   : > { %v745_v22 = vpop.f32.mrb[5].mxu0  ;;  %v766_v0 = vrot.slane %v743_v21, %v758_v17 }
 0x1f2   : > { %v746_v33 = vpop.f32.mrb[6].mxu0 }
 0x1f3   : > { %v747_v42 = vpop.f32.mrb[7].mxu0 }
 0x1f6   : > { %v702_v51 = vpop.f32.mrb[4].mxu1 }
 0x1f7   : > { %v704_v25 = vpop.f32.mrb[5].mxu1 }
 0x1f8   : > { %v752_v34 = vcombine.low %v702_v51, %v704_v25  ;;  %v706_v41 = vpop.f32.mrb[6].mxu1 }
 0x1f9   : > { %v707_v49 = vpop.f32.mrb[7].mxu1 }
 0x1fa   : > { %v759_v50 = vrot.slane %v752_v34, %v758_v17 }
 0x1fc   : > { %v767_v53 = vcombine.low %v759_v50, %v766_v0 }
 0x1fe   : > { %v774_v56 = vrot.slane %v767_v53, %v758_v17 }
 0x200   : > { %v776_v58 = vadd.f32 %v774_v56, %v667_v54 }
 0x202   : > { %781 = vst.msk [vmem:[#allocation3] sm:$0x7] %vm2296_vm4, %v776_v58 }
 0x203 PF: > { %p1384_p0 = scmp.ne.s32.totalorder %s1714_s12, 1 }
 0x204   : > { %vm2942_vm12 = vcmp.eq.s32.totalorder (!%p1384_p0), %v1935_v1, %v2054_v52  ;;  %vm2943_vm8 = vcmp.eq.s32.totalorder (!%p1384_p0), %v1938_v2, %v2054_v52  ;;  %vm2944_vm0 = vcmask (!%p1384_p0), 1043456   ;;  %v1739_v9 = vmov (!%p1384_p0), 1.0|1.0  }
 0x205   : > { %785 = sbr.rel (%p1384_p0) target bundleno = 1063 (0x427), region = 48  ;;  %vm1386_vm11 = vmpackc.low (!%p1384_p0), %vm2943_vm8, %vm2942_vm12  ;;  %1450 = vmatprep.subr.msk.bf16.mxu0 (!%p1384_p0), %vm2944_vm0, %v553_v63  ;;  %vm2946_vm9 = vcmp.eq.s32.totalorder (!%p1384_p0), %v1935_v1, %v2048_v48  ;;  %vm2947_vm2 = vcmp.eq.s32.totalorder (!%p1384_p0), %v1938_v2, %v2048_v48  ;;  %vm2948_vm5 = vcmp.eq.s32.totalorder (!%p1384_p0), %v1941_v3, %v2054_v52  ;;  %vm2949_vm7 = vcmp.eq.s32.totalorder (!%p1384_p0), %v1944_v4, %v2054_v52  ;;  %v794_v63 = vld [vmem:[#allocation2 + $0x8] sm:$0xf] (!%p1384_p0) }
 0x206   : > { %vm2945_vm4 = vmmov (!%p1384_p0), %vm2944_vm0  ;;  %1387 = vmatprep.subr.msk.bf16.mxu1 (!%p1384_p0), %vm1386_vm11, %v1739_v9  ;;  %v1740_v60 = vmov (!%p1384_p0), 0   ;;  %vm2950_vm6 = vcmp.eq.s32.totalorder (!%p1384_p0), %v1941_v3, %v2048_v48  ;;  %vm2951_vm1 = vcmp.eq.s32.totalorder (!%p1384_p0), %v1944_v4, %v2048_v48  ;;  %vm2952_vm8 = vcmp.eq.s32.totalorder (!%p1384_p0), %v1947_v5, %v2054_v52 }
 0x207   : > { %v872_v26 = vsel (!%p1384_p0), %vm2945_vm4, %v552_v62, 0  ;;  %vm1388_vm3 = vmpackc.low (!%p1384_p0), %vm2947_vm2, %vm2946_vm9  ;;  %950 = vmatprep.mubr.bf16.mxu0 (!%p1384_p0), %v1740_v60  ;;  %vm2953_vm11 = vcmp.eq.s32.totalorder (!%p1384_p0), %v1950_v6, %v2054_v52  ;;  %vm2954_vm4 = vcmp.eq.s32.totalorder (!%p1384_p0), %v1947_v5, %v2048_v48  ;;  %vm2955_vm9 = vcmp.eq.s32.totalorder (!%p1384_p0), %v1950_v6, %v2048_v48 }
 0x208   : > { %919 = vmatpush1.bf16.msra.mxu0 (!%p1384_p0), %v872_v26  ;;  %1389 = vmatpush1.bf16.msk.msra.mxu1 (!%p1384_p0), %vm1388_vm3, %v1739_v9  ;;  %vm1390_vm14 = vmpackc.low (!%p1384_p0), %vm2949_vm7, %vm2948_vm5  ;;  %vm2956_vm3 = vcmp.eq.s32.totalorder (!%p1384_p0), %v1953_v7, %v2054_v52  ;;  %vm2957_vm5 = vcmp.eq.s32.totalorder (!%p1384_p0), %v1956_v8, %v2054_v52  ;;  %v806_v2 = vsub.s32 (!%p1384_p0), 2, %v1935_v1 }
 0x209   : > { %v790_v55 = vld [vmem:[#allocation3] sm:$0x7] (!%p1384_p0)  ;;  %1391 = vmatprep.subr.msk.bf16.mxu1 (!%p1384_p0), %vm1390_vm14, %v1739_v9  ;;  %vm1392_vm12 = vmpackc.low (!%p1384_p0), %vm2951_vm1, %vm2950_vm6  ;;  %vm2958_vm14 = vcmp.eq.s32.totalorder (!%p1384_p0), %v1953_v7, %v2048_v48  ;;  %vm2959_vm6 = vcmp.eq.s32.totalorder (!%p1384_p0), %v1956_v8, %v2048_v48  ;;  %v1741_v7 = vmov (!%p1384_p0), 1983009808   ;;  %v793_v8 = vld [vmem:[#allocation2] sm:$0xff] (!%p1384_p0) }
 0x20a   : > { %v791_v61 = vmax.f32 (!%p1384_p0), %v790_v55, 1.0  ;;  %vm1394_vm0 = vmpackc.low (!%p1384_p0), %vm2953_vm11, %vm2952_vm8  ;;  %vm2961_vm8 = vcmp.eq.s32.totalorder (!%p1384_p0), %v1966_v12, %v2054_v52  ;;  %v824_v62 = vunpack.c.l.s4 (!%p1384_p0), %v1741_v7 }
 0x20b   : > { %vm1396_vm2 = vmpackc.low (!%p1384_p0), %vm2955_vm9, %vm2954_vm4  ;;  %vm2963_vm4 = vcmp.eq.s32.totalorder (!%p1384_p0), %v1966_v12, %v2048_v48 }
 0x20c   : > { %1564 = vrcp.f32 %v791_v61  ;;  %1393 = vmatpush1.bf16.msk.msra.mxu1 %vm1392_vm12, %v1739_v9  ;;  %vm1398_vm7 = vmpackc.low %vm2957_vm5, %vm2956_vm3  ;;  %vm2960_vm12 = vcmp.eq.s32.totalorder %v1963_v11, %v2054_v52  ;;  %vm2965_vm3 = vcmp.eq.s32.totalorder %v1977_v16, %v2054_v52  ;;  %v825_v17 = vunpack.c.0.s8 %v824_v62 }
 0x20d   : > { %1395 = vmatprep.subr.msk.bf16.mxu1 %vm1394_vm0, %v1739_v9  ;;  %vm1400_vm1 = vmpackc.low %vm2959_vm6, %vm2958_vm14  ;;  %vm2962_vm0 = vcmp.eq.s32.totalorder %v1963_v11, %v2048_v48  ;;  %vm2967_vm14 = vcmp.eq.s32.totalorder %v1977_v16, %v2048_v48 }
 0x20e   : > { %vm1402_vm11 = vmpackc.low %vm2961_vm8, %vm2960_vm12  ;;  %vm2969_vm12 = vcmp.eq.s32.totalorder %v1983_v19, %v2054_v52  ;;  %v828_v51 = vsub.s32 %v825_v17, %v1935_v1 }
 0x20f   : > { %vm1404_vm9 = vmpackc.low %vm2963_vm4, %vm2962_vm0  ;;  %vm2971_vm0 = vcmp.eq.s32.totalorder %v1983_v19, %v2048_v48 }
 0x210   : > { %1397 = vmatpush1.bf16.msk.msra.mxu1 %vm1396_vm2, %v1739_v9  ;;  %vm2964_vm2 = vcmp.eq.s32.totalorder %v1969_v13, %v2054_v52 }
 0x211   : > { %1399 = vmatprep.subr.msk.bf16.mxu1 %vm1398_vm7, %v1739_v9  ;;  %vm1406_vm5 = vmpackc.low %vm2965_vm3, %vm2964_vm2  ;;  %vm2966_vm7 = vcmp.eq.s32.totalorder %v1969_v13, %v2048_v48  ;;  %vm2973_vm2 = vcmp.eq.s32.totalorder %v1991_v23, %v2054_v52 }
 0x212   : > { %vm1408_vm6 = vmpackc.low %vm2967_vm14, %vm2966_vm7  ;;  %vm2975_vm7 = vcmp.eq.s32.totalorder %v1991_v23, %v2048_v48 }
 0x214   : > { %1401 = vmatpush1.bf16.msk.msra.mxu1 %vm1400_vm1, %v1739_v9  ;;  %vm2968_vm1 = vcmp.eq.s32.totalorder %v1980_v18, %v2054_v52 }
 0x215   : > { %1403 = vmatprep.subr.msk.bf16.mxu1 %vm1402_vm11, %v1739_v9  ;;  %vm1410_vm8 = vmpackc.low %vm2969_vm12, %vm2968_vm1  ;;  %vm2970_vm11 = vcmp.eq.s32.totalorder %v1980_v18, %v2048_v48  ;;  %vm2977_vm1 = vcmp.eq.s32.totalorder %v1997_v27, %v2054_v52 }
 0x216   : > { %v1565_v3 = vpop.eup %1564  ;;  %vm1412_vm4 = vmpackc.low %vm2971_vm0, %vm2970_vm11  ;;  %vm840_vm11 = vcmask 1043458   ;;  %vm2978_vm0 = vcmp.eq.s32.totalorder %v1994_v24, %v2048_v48 }
 0x217   : > { %v799_v4 = vrot.slane %v1565_v3, %v2030_v40  ;;  %v803_v5 = vrot.slane %v1565_v3, %v2036_v44  ;;  %v807_v6 = vrot.slane %v1565_v3, %v806_v2 }
 0x218   : > { %1405 = vmatpush1.bf16.msk.msra.mxu1 %vm1404_vm9, %v1739_v9  ;;  %vm2972_vm9 = vcmp.eq.s32.totalorder %v1986_v20, %v2054_v52 }
 0x219   : > { %v809_v14 = vcombine.low %v799_v4, %v803_v5  ;;  %v812_v59 = vmul.f32 %v807_v6, %v794_v63  ;;  %1407 = vmatprep.subr.msk.bf16.mxu1 %vm1406_vm5, %v1739_v9  ;;  %vm1414_vm3 = vmpackc.low %vm2973_vm2, %vm2972_vm9  ;;  %vm2974_vm5 = vcmp.eq.s32.totalorder %v1986_v20, %v2048_v48  ;;  %vm842_vm2 = vcmask 62468  }
 0x21a   : > { %vm1416_vm14 = vmpackc.low %vm2975_vm7, %vm2974_vm5  ;;  %vm2981_vm5 = vcmp.eq.s32.totalorder %v2003_v29, %v2054_v52 }
 0x21b   : > { %v811_v15 = vmul.f32 %v809_v14, %v793_v8  ;;  %v818_v12 = vpack.c.bf16 %v812_v59, %v812_v59 }
 0x21c   : > { %1409 = vmatpush1.bf16.msk.msra.mxu1 %vm1408_vm6, %v1739_v9  ;;  %vm2976_vm6 = vcmp.eq.s32.totalorder %v1994_v24, %v2054_v52 }
 0x21d   : > { %v814_v11 = vcombine.high %v811_v15, %v811_v15  ;;  %1411 = vmatprep.subr.msk.bf16.mxu1 %vm1410_vm8, %v1739_v9  ;;  %v836_v1 = vrot.slane %v818_v12, %v828_v51  ;;  %vm1418_vm12 = vmpackc.low %vm2977_vm1, %vm2976_vm6  ;;  %vm839_vm8 = vcmask 1041408   ;;  %vm2982_vm1 = vcmp.eq.s32.totalorder %v2000_v28, %v2048_v48 }
 0x21e   : > { %vm841_vm6 = vmor %vm840_vm11, %vm839_vm8  ;;  %vm2986_vm11 = vcmp.eq.s32.totalorder %v2006_v30, %v2048_v48 }
 0x21f   : > { %v1385_v21 = vpack.c.bf16 %v814_v11, %v811_v15 }
 0x220   : > { %1413 = vmatpush1.bf16.msk.msra.mxu1 %vm1412_vm4, %v1739_v9  ;;  %vm2979_vm4 = vcmp.eq.s32.totalorder %v1997_v27, %v2048_v48  ;;  %v1742_v27 = vmov 0.0  }
 0x221   : > { %v829_v13 = vrot.slane %v1385_v21, %v828_v51  ;;  %1415 = vmatprep.subr.msk.bf16.mxu1 %vm1414_vm3, %v1739_v9  ;;  %vm1420_vm9 = vmpackc.low %vm2979_vm4, %vm2978_vm0  ;;  %vm2980_vm3 = vcmp.eq.s32.totalorder %v2000_v28, %v2054_v52  ;;  %vm2984_vm4 = vcmp.eq.s32.totalorder %v2006_v30, %v2054_v52  ;;  %845 = vst [vmem:[#allocation5] sm:$0x1] %v1742_v27 }
 0x222   : > { %vm1422_vm7 = vmpackc.low %vm2981_vm5, %vm2980_vm3  ;;  %vm2985_vm3 = vcmp.eq.s32.totalorder %v2009_v31, %v2054_v52  ;;  %vm2988_vm5 = vcmp.eq.s32.totalorder %v2012_v32, %v2054_v52  ;;  %846 = vst [vmem:[#allocation6] sm:$0x1] %v1742_v27 }
 0x223   : > { %v837_v16 = vcombine.low %v829_v13, %v836_v1  ;;  %vm1426_vm8 = vmpackc.low %vm2985_vm3, %vm2984_vm4  ;;  %vm2992_vm4 = vcmp.eq.s32.totalorder %v2018_v36, %v2054_v52  ;;  %vm2993_vm3 = vcmp.eq.s32.totalorder %v2021_v37, %v2054_v52 }
 0x224   : > { %1417 = vmatpush1.bf16.msk.msra.mxu1 %vm1416_vm14, %v1739_v9  ;;  %vm843_vm14 = vmor %vm842_vm2, %vm841_vm6 }
 0x225   : > { %1419 = vmatprep.subr.msk.bf16.mxu1 %vm1418_vm12, %v1739_v9  ;;  %844 = vst.msk [vmem:[#allocation4] sm:$0x3f] %vm843_vm14, %v837_v16  ;;  %vm2983_vm12 = vcmp.eq.s32.totalorder %v2003_v29, %v2048_v48  ;;  %vm2990_vm14 = vcmp.eq.s32.totalorder %v2012_v32, %v2048_v48 }
 0x226   : > { %vm1424_vm0 = vmpackc.low %vm2983_vm12, %vm2982_vm1  ;;  %vm2991_vm1 = vcmp.eq.s32.totalorder %v2015_v35, %v2048_v48 }
 0x227   : > { %vm1432_vm12 = vmpackc.low %vm2991_vm1, %vm2990_vm14  ;;  %vm2998_vm14 = vcmp.eq.s32.totalorder %v2024_v38, %v2048_v48  ;;  %vm2999_vm1 = vcmp.eq.s32.totalorder %v2027_v39, %v2048_v48 }
 0x228   : > { %1421 = vmatpush1.bf16.msk.msra.mxu1 %vm1420_vm9, %v1739_v9  ;;  %vm2987_vm9 = vcmp.eq.s32.totalorder %v2009_v31, %v2048_v48  ;;  %v991_v16 = vld [vmem:[#allocation5] sm:$0x1] }
 0x229   : > { %1423 = vmatprep.subr.msk.bf16.mxu1 %vm1422_vm7, %v1739_v9  ;;  %vm1428_vm2 = vmpackc.low %vm2987_vm9, %vm2986_vm11  ;;  %vm2989_vm7 = vcmp.eq.s32.totalorder %v2015_v35, %v2054_v52  ;;  %vm2994_vm11 = vcmp.eq.s32.totalorder %v2018_v36, %v2048_v48  ;;  %vm2995_vm9 = vcmp.eq.s32.totalorder %v2021_v37, %v2048_v48 }
 0x22a   : > { %vm1430_vm6 = vmpackc.low %vm2989_vm7, %vm2988_vm5  ;;  %vm2996_vm5 = vcmp.eq.s32.totalorder %v2024_v38, %v2054_v52  ;;  %vm2997_vm7 = vcmp.eq.s32.totalorder %v2027_v39, %v2054_v52 }
 0x22c   : > { %1425 = vmatpush1.bf16.msk.msra.mxu1 %vm1424_vm0, %v1739_v9  ;;  %v847_v18 = vld [vmem:[#allocation4] sm:$0x3f]  ;;  %vm867_vm0 = vcmask 64512  }
 0x22d   : > { %1427 = vmatprep.subr.msk.bf16.mxu1 %vm1426_vm8, %v1739_v9  ;;  %v849_v19 = vcombine.high %v847_v18, %v847_v18  ;;  %v856_v20 = vrot.slane %v847_v18, %v828_v51  ;;  %vm1434_vm8 = vmpackc.low %vm2993_vm3, %vm2992_vm4  ;;  %vm3001_vm3 = vcmp.eq.s32.totalorder %v2033_v43, %v2048_v48 }
 0x22f   : > { %v863_v23 = vrot.slane %v849_v19, %v828_v51  ;;  %v864_v24 = vcombine.high %v856_v20, %v856_v20 }
 0x230   : > { %1429 = vmatpush1.bf16.msk.msra.mxu1 %vm1428_vm2, %v1739_v9  ;;  %vm1436_vm2 = vmpackc.low %vm2995_vm9, %vm2994_vm11 }
 0x231   : > { %1431 = vmatprep.subr.msk.bf16.mxu1 %vm1430_vm6, %v1739_v9  ;;  %1451 = vmatmul.mubr.msk.bf16.vlgmr.msra.gmra.mrb[0].mxu0 %vm867_vm0, %v863_v23  ;;  %vm1438_vm6 = vmpackc.low %vm2997_vm7, %vm2996_vm5  ;;  %vm3000_vm0 = vcmp.eq.s32.totalorder %v2033_v43, %v2054_v52  ;;  %vm986_vm7 = vcmp.ne.s32.totalorder %v1960_v10, 0 }
 0x232   : > { %909 = vmatprep.mubr.bf16.mxu1 %v864_v24  ;;  %vm1442_vm4 = vmpackc.low %vm381_vm13, %vm3000_vm0  ;;  %vm3003_vm13 = vcmp.eq.s32.totalorder %v2042_v46, %v2048_v48 }
 0x233   : > { %vm1446_vm9 = vmpackc.low %vm385_vm10, %vm383_vm15  ;;  %vm3005_vm10 = vcmask 1043456  }
 0x234   : > { %1433 = vmatpush1.bf16.msk.msra.mxu1 %vm1432_vm12, %v1739_v9  ;;  %vm1440_vm12 = vmpackc.low %vm2999_vm1, %vm2998_vm14  ;;  %vm1005_vm1 = vcmask 1040384  }
 0x235   : > { %1435 = vmatprep.subr.msk.bf16.mxu1 %vm1434_vm8, %v1739_v9  ;;  %vm3002_vm8 = vcmp.eq.s32.totalorder %v2039_v45, %v2048_v48  ;;  %vm3006_vm15 = vmmov %vm3005_vm10 }
 0x236   : > { %vm1444_vm11 = vmpackc.low %vm3002_vm8, %vm3001_vm3 }
 0x238   : > { %1437 = vmatpush1.bf16.msk.msra.mxu1 %vm1436_vm2, %v1739_v9  ;;  %vm3004_vm2 = vcmp.eq.s32.totalorder %v2045_v47, %v2048_v48 }
 0x239   : > { %1439 = vmatprep.subr.msk.bf16.mxu1 %vm1438_vm6, %v1739_v9  ;;  %vm1448_vm5 = vmpackc.low %vm3004_vm2, %vm3003_vm13  ;;  %vm987_vm6 = vcmp.ne.s32.totalorder %v1960_v10, 255 }
 0x23a   : > { %vm988_vm14 = vmand %vm986_vm7, %vm987_vm6 }
 0x23b   : > { %v1454_v50 = vsel %vm988_vm14, 1.0, %v1742_v27 }
 0x23c   : > { %1441 = vmatpush1.bf16.msk.msra.mxu1 %vm1440_vm12, %v1739_v9  ;;  %v996_v26 = vrot.slane %v1454_v50, %v2030_v40  ;;  %v1000_v61 = vrot.slane %v1454_v50, %v2036_v44 }
 0x23d   : > { %1443 = vmatprep.subr.msk.bf16.mxu1 %vm1442_vm4, %v1739_v9 }
 0x23e   : > { %v1022_v5 = vsel %vm1005_vm1, %v996_v26, 0.0  ;;  %v1023_v6 = vsel %vm1005_vm1, %v1000_v61, 0.0 }
 0x23f   : > { %v1024_v62 = vadd.f32 %v1023_v6, %v1022_v5 }
 0x240   : > { %1445 = vmatpush1.bf16.msk.msra.mxu1 %vm1444_vm11, %v1739_v9 }
 0x241   : > { %1447 = vmatprep.subr.msk.bf16.mxu1 %vm1446_vm9, %v1739_v9 }
 0x244   : > { %1449 = vmatpush1.bf16.msk.msra.mxu1 %vm1448_vm5, %v1739_v9 }
 0x247   : > { %910 = vmatmul.mubr.bf16.vlgmr.msra.gmra.mrb[0].mxu1 %v856_v20  ;;  %v1021_v20 = vld [vmem:[#allocation6] sm:$0x1] }
 0x304   : > { %v952_v28 = vpop.f32.mrb[0].mxu0 }
 0x305   : > { %v954_v29 = vpop.f32.mrb[1].mxu0 }
 0x306   : > { %v956_v30 = vpop.f32.mrb[2].mxu0 }
 0x307   : > { %v957_v31 = vpop.f32.mrb[3].mxu0 }
 0x31a   : > { %v911_v32 = vpop.f32.mrb[0].mxu1 }
 0x31b   : > { %v953_v35 = vadd.f32 %v952_v28, %v911_v32  ;;  %v913_v36 = vpop.f32.mrb[1].mxu1 }
 0x31c   : > { %v955_v37 = vadd.f32 %v954_v29, %v913_v36  ;;  %v915_v38 = vpop.f32.mrb[2].mxu1 }
 0x31d   : > { %v916_v39 = vpop.f32.mrb[3].mxu1 }
 0x31e   : > { %v961_v43 = vcombine.low %v953_v35, %v955_v37 }
 0x320   : > { %v963_v45 = vsub.f32 %v2205_v57, %v961_v43 }
 0x322   : > { %v964_v46 = vand.u32 2147483647, %v963_v45 }
 0x324   : > { %v966_v47 = vcombine.high %v964_v46, %v964_v46  ;;  %v968_v48 = vsel %vm3005_vm10, %v964_v46, 0.0 }
 0x325   : > { %v969_v52 = vrot.slane %v968_v48, 4 }
 0x326   : > { %v975_v22 = vsel %vm3006_vm15, %v966_v47, 0.0 }
 0x327   : > { %v970_v25 = vadd.f32 %v969_v52, %v968_v48  ;;  %v976_v33 = vrot.slane %v975_v22, 4 }
 0x329   : > { %v971_v0 = vrot.slane %v970_v25, 2  ;;  %v977_v34 = vadd.f32 %v976_v33, %v975_v22 }
 0x32b   : > { %v978_v41 = vrot.slane %v977_v34, 2  ;;  %v972_v42 = vadd.f32 %v971_v0, %v970_v25 }
 0x32d   : > { %v973_v49 = vrot.slane %v972_v42, 1  ;;  %v979_v57 = vadd.f32 %v978_v41, %v977_v34 }
 0x32f   : > { %v974_v53 = vadd.f32 %v973_v49, %v972_v42  ;;  %v980_v54 = vrot.slane %v979_v57, 1 }
 0x331   : > { %v981_v56 = vadd.f32 %v980_v54, %v979_v57  ;;  %v1452_v58 = vadd.f32 -0.1, %v974_v53 }
 0x333   : > { %v1453_v55 = vadd.f32 -0.1, %v981_v56  ;;  %v984_v9 = vmax.f32 %v1452_v58, 0.0 }
 0x335   : > { %v985_v60 = vmax.f32 %v1453_v55, 0.0  ;;  %v1003_v10 = vmul.f32 %v996_v26, %v984_v9 }
 0x337   : > { %v1004_v2 = vmul.f32 %v1000_v61, %v985_v60  ;;  %v1006_v3 = vsel %vm1005_vm1, %v1003_v10, 0.0 }
 0x339   : > { %v1007_v4 = vsel %vm1005_vm1, %v1004_v2, 0.0 }
 0x33a   : > { %v1008_v7 = vadd.f32 %v1007_v4, %v1006_v3 }
 0x33c   : > { %1009 = vadd.xlane.f32.xlu0 %v1008_v7 }
 0x340   : > { %1025 = vadd.xlane.f32.xlu0 %v1024_v62 }
 0x3c9   : > { %v1010_v8 = vpop.xlane.xlu0 %1009 }
 0x3ca   : > { %v1011_v63 = vrot.slane %v1010_v8, 4 }
 0x3cc   : > { %v1012_v14 = vadd.f32 %v1011_v63, %v1010_v8 }
 0x3cd   : > { %v1026_v40 = vpop.xlane.xlu0 %1025 }
 0x3ce   : > { %v1013_v15 = vrot.slane %v1012_v14, 2  ;;  %v1027_v59 = vrot.slane %v1026_v40, 4 }
 0x3d0   : > { %v1028_v17 = vadd.f32 %v1027_v59, %v1026_v40  ;;  %v1014_v44 = vadd.f32 %v1013_v15, %v1012_v14 }
 0x3d2   : > { %v1029_v11 = vrot.slane %v1028_v17, 2  ;;  %v1015_v12 = vrot.slane %v1014_v44, 1 }
 0x3d4   : > { %v1030_v21 = vadd.f32 %v1029_v11, %v1028_v17  ;;  %v1016_v51 = vadd.f32 %v1015_v12, %v1014_v44 }
 0x3d6   : > { %1462 = vpush %v1016_v51  ;;  %v1031_v13 = vrot.slane %v1030_v21, 1 }
 0x3d8   : > { %v1032_v1 = vadd.f32 %v1031_v13, %v1030_v21 }
 0x3da   : > { %1464 = vpush %v1032_v1 }
 0x407   : > { %s1463_s12 = spop %1462 }
 0x408   : > { %v1018_v18 = vstv %s1463_s12 }
 0x409   : > { %v1019_v19 = vadd.f32 %v1018_v18, %v991_v16 }
 0x40b   : > { %1020 = vst [vmem:[#allocation5] sm:$0x1] %v1019_v19  ;;  %s1465_s6 = spop %1464 }
 0x40c   : > { %v1034_v23 = vstv %s1465_s6 }
 0x40d   : > { %v1035_v24 = vadd.f32 %v1034_v23, %v1021_v20 }
 0x40f   : > { %1036 = vst [vmem:[#allocation6] sm:$0x1] %v1035_v24 }
 0x412   : > { %v1040_v30 = vld [vmem:[#allocation5] sm:$0x1] }
 0x416   : > { %v1041_v27 = vld [vmem:[#allocation6] sm:$0x1] }
 0x417   : > { %v1042_v28 = vadd.f32 1e-05, %v1041_v27 }
 0x419   : > { %1566 = vrcp.f32 %v1042_v28 }
 0x423   : > { %v1567_v29 = vpop.eup %1566 }
 0x424   : > { %v1044_v31 = vmul.f32 %v1567_v29, %v1040_v30 }
 0x426   : > { %1045 = vst [vmem:[%s223_s23] sm:$0x1] %v1044_v31 }
 0x427 PF: > { %s1455_s5 = sshll.u32 %s1718_s13, 4  ;;  %s1059_s4 = sshll.u32 %s223_s23, 4  ;;  %s1060_s4 = int_to_ptr.vmem [resolvable:$true] %s1059_s4 }
 0x428   : > { %s2799_s25 = scalar_lea.hbm %s2851_s2, %s1455_s5  ;;  %s1047_s17 = scalar_lea.sflag [#allocation9], %s1920_s7 }
 0x429   : > { %s1628_s21 = scalar_lea.vmem %s1060_s4, 16  ;;  %p3007_p3 = scmp.ne.s32.totalorder %s2866_s24, 0 }
 0x42a   : > { %p1629_p7 = scmp.ne.s32.totalorder %s1060_s4, %s1628_s21  ;;  %s1743_s29 = smov [#allocation12]  }
 0x42b   : > { %s1632_s22 = sshll.u32 %s1743_s29, 4  ;;  %s1633_s22 = int_to_ptr.vmem [resolvable:$false] %s1632_s22 }
 0x42c   : > { %p1630_p8 = pnand %p1629_p7, %p3007_p3  ;;  %s1634_s8 = scalar_lea.vmem %s1633_s22, 32 }
 0x42d   : > { %p1635_p1 = scmp.lt.s32.totalorder %s1060_s4, %s1633_s22  ;;  %p1636_p2 = scmp.lt.s32.totalorder %s1634_s8, %s1628_s21 }
 0x42e   : > { %p1631_p12 = pneg %p1630_p8 }
 0x42f   : > { %p1637_p10 = por %p1636_p2, %p1635_p1 }
 0x431   : > { %p1638_p11 = pnand %p1637_p10, %p1631_p12 }
 0x433   : > { %1641 = shalt.err (!%p1638_p11)
}
 0x434   : > { %s1642_s13 = scalar_lea.hbm %s2799_s25, 16  ;;  %s1646_s3 = scalar_lea.hbm %s2851_s2, 32 }
 0x435   : > { %p1643_p4 = scmp.ne.s32.totalorder %s2799_s25, %s1642_s13  ;;  %p1647_p5 = scmp.lt.u32.totalorder %s2799_s25, %s2851_s2 }
 0x436   : > { %p1648_p9 = scmp.lt.u32.totalorder %s1646_s3, %s1642_s13  ;;  %p1650_p7 = scmp.lt.u32.totalorder %s1642_s13, %s2799_s25 }
 0x437   : > { %p1644_p6 = pnand %p1643_p4, %p3007_p3 }
 0x438   : > { %p1649_p0 = por %p1648_p9, %p1647_p5 }
 0x439   : > { %p1645_p13 = pneg %p1644_p6 }
 0x43a   : > { %p1651_p8 = por %p1650_p7, %p1649_p0 }
 0x43c   : > { %p1652_p12 = pnand %p1651_p8, %p1645_p13 }
 0x43e   : > { %1655 = shalt.err (!%p1652_p12)
}
 0x43f   : > { %1470 = dma.vmem_to_hbm [thread:$0]  (%p3007_p3), %s1060_s4, 16, %s2799_s25, %s1047_s17  }
 0x440 PF: > { %p1484_p1 = scmp.ge.s32.totalorder %s1730_s16, 2  ;;  %s1071_s6 = sand.u32 1, %s1702_s9  }
 0x441   : > { %p3008_p2 = scmp.ne.s32.totalorder %s2867_s26, 0  ;;  %s1072_s5 = scalar_lea.sflag [#allocation9], %s1071_s6 }
 0x443   : > { %p1480_p10 = pnand %p1484_p1, %p3008_p2 }
 0x445   : > { %1697 = dma.done.wait (!%p1480_p10), %s1072_s5, 16  }
 0x446   : > { %1699 = vsyncadd (!%p1480_p10), %s1072_s5, 4294967280  ;;  %s21_s16 = sadd.s32 1, %s1730_s16   ;;  %s3009_s9 = smov %s1706_s10 }
 0x447   : > { %p18_p11 = scmp.ge.s32.totalorder %s21_s16, 6   ;;  %s3010_s10 = smov %s1710_s11 }
 0x448   : > { %s3011_s11 = smov %s1837_s28  ;;  %s3012_s12 = smov %s1722_s14 }
 0x449   : > { %s3013_s13 = smov %s1726_s15  ;;  %s3014_s14 = smov %s3017_s19 }
 0x44a   : > { %s3015_s15 = smov %s3021_s20  ;;  %20 = sbr.rel (!%p18_p11) target bundleno = 9 (0x9), region = 106 }
 0x451   :  { %1076 = vsyncpa [#allocation8], 1 }
 0x452   :  { %1078 = vsyncpa [#allocation8 + $0x1], 1 }
 0x453   :  { %1079 = vsyncpa [#allocation11], 1 }
 0x454   :  { %1081 = vsyncpa [#allocation11 + $0x1], 1 }
 0x455   :  { %1082 = vsyncpa [#allocation9], 1 }
 0x456   :  { %1084 = vsyncpa [#allocation9 + $0x1], 1 }

</bundles_post_ra>
